<compile_context>
chip_gen: v5e
topology: v5e:2x2
jax: 0.10.0
libtpu: 0.0.40
codegen_flags: <defaults>
</compile_context>

<pallas_src>
import functools

import jax
import jax.numpy as jnp
from jax.experimental import pallas as pl
from jax.experimental.pallas import tpu as pltpu


# ----------------------------------------------------------------------------
# helpers
# ----------------------------------------------------------------------------
def _pick_div(n, candidates):
    """Largest candidate that divides n, else n itself (single tile)."""
    for c in candidates:
        if c <= n and n % c == 0:
            return c
    return n


def _vmem_limit(nbytes):
    """Explicit scoped-VMEM limit derived from the per-step working set."""
    return int(min(max(2 * nbytes + (8 << 20), 32 << 20), 64 << 20))


# ----------------------------------------------------------------------------
# 3x3 same-padding convolution, row-tiled.
#   - fold_kx=True  : 3 MXU dots per tile with K = 3*Cin (heavy layers)
#   - fold_kx=False : 9 small dots (Cin=3 first layer, avoids tiny-lane concat)
# Optional fused ReLU, optional fused (ReLU + 2x2 max-pool) second output.
# ----------------------------------------------------------------------------
def _conv_body(x_ref, w_ref, b_ref, *, TH, W, Cin, Cout, fold_kx):
    xb = x_ref[0, 0].astype(jnp.bfloat16)            # (TH+2, W+2, Cin)
    acc = jnp.zeros((TH * W, Cout), jnp.float32)
    if fold_kx:
        for ky in range(3):
            rows = xb[ky:ky + TH]                    # (TH, W+2, Cin)
            patch = jnp.concatenate(
                [rows[:, 0:W], rows[:, 1:W + 1], rows[:, 2:W + 2]], axis=-1)
            patch = patch.reshape(TH * W, 3 * Cin)   # K = 3*Cin
            acc = acc + jnp.dot(patch, w_ref[ky],
                                preferred_element_type=jnp.float32)
    else:
        for ky in range(3):
            for kx in range(3):
                patch = xb[ky:ky + TH, kx:kx + W, :].reshape(TH * W, Cin)
                acc = acc + jnp.dot(patch, w_ref[ky * 3 + kx],
                                    preferred_element_type=jnp.float32)
    return acc + b_ref[0, :]


def _conv_kernel(x_ref, w_ref, b_ref, o_ref, *, TH, W, Cin, Cout, relu, fold_kx):
    acc = _conv_body(x_ref, w_ref, b_ref, TH=TH, W=W, Cin=Cin, Cout=Cout,
                     fold_kx=fold_kx)
    if relu:
        acc = jnp.maximum(acc, 0.0)
    o_ref[0] = acc.reshape(TH, W, Cout)


def _conv_pool_kernel(x_ref, w_ref, b_ref, o_ref, p_ref, *, TH, W, Cin, Cout,
                      fold_kx):
    acc = _conv_body(x_ref, w_ref, b_ref, TH=TH, W=W, Cin=Cin, Cout=Cout,
                     fold_kx=fold_kx)
    o_ref[0] = acc.reshape(TH, W, Cout)                        # pre-ReLU feature
    r = jnp.maximum(acc, 0.0).reshape(TH // 2, 2, W // 2, 2, Cout)
    p_ref[0] = jnp.max(jnp.max(r, axis=3), axis=1)             # relu + 2x2 pool


def conv3x3(x, w, b, *, relu, pool=False):
    """x: (N,H,W,Cin), w: (3,3,Cin,Cout), b: (Cout,) -> feature [, pooled]."""
    N, H, W, Cin = x.shape
    Cout = w.shape[-1]
    TH = _pick_div(H, (16, 8, 4, 2))
    if pool:
        assert H % 2 == 0 and TH % 2 == 0, "fused pooling needs even rows"
    n_tiles = H // TH
    fold_kx = Cin >= 8

    # Halo row-tiles; the zero pad (and any preceding elementwise normalize)
    # fuses into this single XLA relayout.
    xpad = jnp.pad(x, ((0, 0), (1, 1), (1, 1), (0, 0)))
    if n_tiles == 1:
        xt = xpad[:, None]                                     # (N,1,H+2,W+2,C)
    else:
        ridx = (jnp.arange(n_tiles)[:, None] * TH
                + jnp.arange(TH + 2)[None, :])
        xt = xpad[:, ridx]                                     # (N,T,TH+2,W+2,C)

    if fold_kx:
        w_packed = w.reshape(3, 3 * Cin, Cout).astype(jnp.bfloat16)
    else:
        w_packed = w.reshape(9, Cin, Cout).astype(jnp.bfloat16)
    b2 = b.reshape(1, Cout).astype(jnp.float32)

    in_specs = [
        pl.BlockSpec((1, 1, TH + 2, W + 2, Cin), lambda n, r: (n, r, 0, 0, 0)),
        pl.BlockSpec(w_packed.shape, lambda n, r: (0, 0, 0)),
        pl.BlockSpec((1, Cout), lambda n, r: (0, 0)),
    ]
    out_shape = [jax.ShapeDtypeStruct((N, H, W, Cout), jnp.float32)]
    out_specs = [pl.BlockSpec((1, TH, W, Cout), lambda n, r: (n, r, 0, 0))]
    if pool:
        out_shape.append(
            jax.ShapeDtypeStruct((N, H // 2, W // 2, Cout), jnp.float32))
        out_specs.append(
            pl.BlockSpec((1, TH // 2, W // 2, Cout), lambda n, r: (n, r, 0, 0)))
        kern = functools.partial(_conv_pool_kernel, TH=TH, W=W, Cin=Cin,
                                 Cout=Cout, fold_kx=fold_kx)
    else:
        kern = functools.partial(_conv_kernel, TH=TH, W=W, Cin=Cin, Cout=Cout,
                                 relu=relu, fold_kx=fold_kx)

    blk_bytes = ((TH + 2) * (W + 2) * Cin * 4                  # input tile
                 + TH * W * Cout * 4 * (2 if pool else 1)      # output tile(s)
                 + TH * W * 3 * Cin * 2 + TH * W * Cout * 4    # patch/acc temps
                 + w_packed.size * 2)
    flops = 2 * N * H * W * 9 * Cin * Cout
    bytes_accessed = xt.size * 4 + N * H * W * Cout * 4 + w_packed.size * 2

    outs = pl.pallas_call(
        kern,
        out_shape=out_shape,
        grid=(N, n_tiles),
        in_specs=in_specs,
        out_specs=out_specs,
        compiler_params=pltpu.CompilerParams(
            dimension_semantics=("parallel", "parallel"),
            vmem_limit_bytes=_vmem_limit(blk_bytes)),
        cost_estimate=pl.CostEstimate(flops=int(flops), transcendentals=0,
                                      bytes_accessed=int(bytes_accessed)),
    )(xt, w_packed, b2)
    return outs if pool else outs[0]


# ----------------------------------------------------------------------------
# Loss reductions (L1 / sum-of-squares), tiled over lane-dense row chunks
# ----------------------------------------------------------------------------
def _diff_reduce_kernel(a_ref, b_ref, o_ref, acc_ref, *, mode):
    i = pl.program_id(0)

    @pl.when(i == 0)
    def _():
        acc_ref[0] = jnp.float32(0.0)

    d = a_ref[...].astype(jnp.float32) - b_ref[...].astype(jnp.float32)
    val = jnp.sum(jnp.abs(d)) if mode == "l1" else jnp.sum(d * d)
    acc_ref[0] = acc_ref[0] + val

    @pl.when(i == pl.num_programs(0) - 1)
    def _():
        o_ref[0, 0] = acc_ref[0]


def _diff_reduce(a, b, mode):
    total = a.size
    L = None
    for cand in (2048, 1024, 512, 256, 128):
        if total % cand == 0:
            L = cand
            break
    if L is None:
        L = a.shape[-1]
    a2 = a.reshape(-1, L)
    b2 = b.reshape(-1, L)
    rows = a2.shape[0]
    TR = _pick_div(rows, (2048, 1024, 512, 256, 128, 64, 32, 16, 8))
    n = rows // TR

    out = pl.pallas_call(
        functools.partial(_diff_reduce_kernel, mode=mode),
        out_shape=jax.ShapeDtypeStruct((1, 1), jnp.float32),
        grid=(n,),
        in_specs=[pl.BlockSpec((TR, L), lambda i: (i, 0)),
                  pl.BlockSpec((TR, L), lambda i: (i, 0))],
        out_specs=pl.BlockSpec(memory_space=pltpu.MemorySpace.SMEM),
        scratch_shapes=[pltpu.SMEM((1,), jnp.float32)],
        compiler_params=pltpu.CompilerParams(
            dimension_semantics=("arbitrary",),
            vmem_limit_bytes=_vmem_limit(2 * TR * L * 4)),
    )(a2, b2)
    return out[0, 0]


def l1_loss(a, b):
    return _diff_reduce(a, b, "l1") / a.size


def l2_loss(a, b):  # MSELoss
    return _diff_reduce(a, b, "sq") / a.size


def fro_norm_diff(a, b):  # torch.norm(a - b, p='fro')
    return jnp.sqrt(_diff_reduce(a, b, "sq"))


# ----------------------------------------------------------------------------
# Gram matrix: (N, H, W, C) -> (N, C, C) / (C*H*W), tiled over HW reduction
# ----------------------------------------------------------------------------
def _gram_kernel(f_ref, o_ref, acc_ref, *, scale):
    k = pl.program_id(1)

    @pl.when(k == 0)
    def _():
        acc_ref[...] = jnp.zeros_like(acc_ref)

    f = f_ref[0].astype(jnp.bfloat16)                  # (TK, C)
    acc_ref[...] += jax.lax.dot_general(
        f, f, (((0,), (0,)), ((), ())), preferred_element_type=jnp.float32)

    @pl.when(k == pl.num_programs(1) - 1)
    def _():
        o_ref[0] = acc_ref[...] * scale


def gram_mat(x):
    N, H, W, C = x.shape
    HW = H * W
    f = x.reshape(N, HW, C)
    TK = _pick_div(HW, (2048, 1024, 512, 256, 128))
    nk = HW // TK
    kern = functools.partial(_gram_kernel, scale=1.0 / (C * H * W))
    return pl.pallas_call(
        kern,
        out_shape=jax.ShapeDtypeStruct((N, C, C), jnp.float32),
        grid=(N, nk),
        in_specs=[pl.BlockSpec((1, TK, C), lambda n, k: (n, k, 0))],
        out_specs=pl.BlockSpec((1, C, C), lambda n, k: (n, 0, 0)),
        scratch_shapes=[pltpu.VMEM((C, C), jnp.float32)],
        compiler_params=pltpu.CompilerParams(
            dimension_semantics=("parallel", "arbitrary"),
            vmem_limit_bytes=_vmem_limit(TK * C * 4 + 3 * C * C * 4)),
    )(f)


# ----------------------------------------------------------------------------
# Truncated VGG19 feature extractor (up to the deepest requested layer)
# ----------------------------------------------------------------------------
class VGGFeatureExtractor:
    _SUPPORTED = ("conv1_2", "conv2_2")  # features taken pre-ReLU, as in basicsr

    def __init__(self, layer_name_list, vgg_type="vgg19",
                 use_input_norm=True, range_norm=False,
                 key=jax.random.PRNGKey(42)):
        assert vgg_type == "vgg19"
        for k in layer_name_list:
            assert k in self._SUPPORTED, f"unsupported layer {k}"
        self.layer_name_list = list(layer_name_list)
        self.use_input_norm = use_input_norm
        self.range_norm = range_norm

        keys = jax.random.split(key, 4)

        def init(k, cin, cout):
            std = (2.0 / (9 * cin)) ** 0.5
            w = std * jax.random.normal(k, (3, 3, cin, cout), jnp.float32)
            b = jnp.zeros((cout,), jnp.float32)
            return w, b

        # TODO(synk): load pretrained ImageNet VGG19 weights; He init used here.
        self.params = {
            "conv1_1": init(keys[0], 3, 64),
            "conv1_2": init(keys[1], 64, 64),
            "conv2_1": init(keys[2], 64, 128),
            "conv2_2": init(keys[3], 128, 128),
        }
        self.mean = jnp.array([0.485, 0.456, 0.406],
                              jnp.float32).reshape(1, 1, 1, 3)
        self.std = jnp.array([0.229, 0.224, 0.225],
                             jnp.float32).reshape(1, 1, 1, 3)

    def __call__(self, x_nhwc):
        x = x_nhwc
        if self.range_norm:
            x = (x + 1.0) / 2.0
        if self.use_input_norm:
            # fuses (via XLA) into the conv1_1 halo-tile relayout
            x = (x - self.mean) / self.std

        feats = {}
        need_deeper = "conv2_2" in self.layer_name_list

        h = conv3x3(x, *self.params["conv1_1"], relu=True)           # conv1_1+relu
        if need_deeper:
            # conv1_2 with fused relu1_2 + pool1 as a second kernel output
            f12, pooled = conv3x3(h, *self.params["conv1_2"],
                                  relu=False, pool=True)
            if "conv1_2" in self.layer_name_list:
                feats["conv1_2"] = f12                               # pre-ReLU
            h = conv3x3(pooled, *self.params["conv2_1"], relu=True)  # conv2_1+relu
            feats["conv2_2"] = conv3x3(h, *self.params["conv2_2"],
                                       relu=False)                   # pre-ReLU
        else:
            feats["conv1_2"] = conv3x3(h, *self.params["conv1_2"], relu=False)
        return feats


# ----------------------------------------------------------------------------
# PerceptualLoss
# ----------------------------------------------------------------------------
class PerceptualLoss:
    def __init__(self, layer_weights, vgg_type="vgg19", use_input_norm=True,
                 range_norm=False, perceptual_weight=1.0, style_weight=0.0,
                 criterion="l1", key=jax.random.PRNGKey(42)):
        self.perceptual_weight = perceptual_weight
        self.style_weight = style_weight
        self.layer_weights = dict(layer_weights)
        self.vgg = VGGFeatureExtractor(
            layer_name_list=list(layer_weights.keys()), vgg_type=vgg_type,
            use_input_norm=use_input_norm, range_norm=range_norm, key=key)
        self.criterion_type = criterion
        if criterion == "l1":
            self.criterion = l1_loss
        elif criterion == "l2":
            self.criterion = l2_loss
        elif criterion == "fro":
            self.criterion = None
        else:
            raise NotImplementedError(
                f"{criterion} criterion has not been supported.")

    def __call__(self, x, gt):
        """x, gt: (n, c, h, w) float32 (NCHW, as in the PyTorch reference)."""
        n = x.shape[0]
        x_nhwc = jnp.transpose(x, (0, 2, 3, 1))
        gt_nhwc = jnp.transpose(jax.lax.stop_gradient(gt), (0, 2, 3, 1))
        # one VGG pass over [x; gt]: half the pallas_call launches, twice the
        # parallel grid work per call (feeds both TensorCores on v7x).
        feats = self.vgg(jnp.concatenate([x_nhwc, gt_nhwc], axis=0))

        if self.perceptual_weight > 0:
            percep_loss = jnp.float32(0.0)
            for k in feats.keys():
                fx, fgt = feats[k][:n], feats[k][n:]
                if self.criterion_type == "fro":
                    percep_loss += fro_norm_diff(fx, fgt) * self.layer_weights[k]
                else:
                    percep_loss += self.criterion(fx, fgt) * self.layer_weights[k]
            percep_loss = percep_loss * self.perceptual_weight
        else:
            percep_loss = None

        if self.style_weight > 0:
            style_loss = jnp.float32(0.0)
            for k in feats.keys():
                g = gram_mat(feats[k])              # batched over x and gt
                gx, ggt = g[:n], g[n:]
                if self.criterion_type == "fro":
                    style_loss += fro_norm_diff(gx, ggt) * self.layer_weights[k]
                else:
                    style_loss += self.criterion(gx, ggt) * self.layer_weights[k]
            style_loss = style_loss * self.style_weight
        else:
            style_loss = None

        return percep_loss, style_loss


# ----------------------------------------------------------------------------
if __name__ == "__main__":
    key = jax.random.PRNGKey(0)
    kx, kg = jax.random.split(key)
    # (n, c, h, w) RGB images in [0, 1]
    x = jax.random.uniform(kx, (2, 3, 16, 16), jnp.float32)
    gt = jax.random.uniform(kg, (2, 3, 16, 16), jnp.float32)

    loss_fn = PerceptualLoss(
        layer_weights={"conv1_2": 1.0, "conv2_2": 1.0},
        vgg_type="vgg19",
        use_input_norm=True,
        range_norm=False,
        perceptual_weight=1.0,
        style_weight=1.0,      # exercise the Gram/style branch too
        criterion="l1",
    )

    percep, style = loss_fn(x, gt)
    jax.block_until_ready((percep, style))
    print("KERNEL_OK")
</pallas_src>

<mosaic_0001>
module attributes {stable_mosaic.version = 11 : i64} {
  func.func @_conv_kernel(%arg0: i32, %arg1: i32, %arg2: memref<1x1x18x18x3xf32, #tpu.memory_space<vmem>>, %arg3: memref<9x3x64xbf16, #tpu.memory_space<vmem>>, %arg4: memref<1x64xf32, #tpu.memory_space<vmem>>, %arg5: memref<1x16x16x64xf32, #tpu.memory_space<vmem>>) attributes {dimension_semantics = [#tpu.dimension_semantics<parallel>, #tpu.dimension_semantics<parallel>], iteration_bounds = array<i64: 4, 1>, scalar_prefetch = 0 : i64, scratch_operands = 0 : i64, tpu.core_type = #tpu.core_type<tc>, window_params = [{transform_indices = @transform_0, window_bounds = array<i64: 1, 1, 18, 18, 3>}, {pipeline_mode = #tpu.pipeline_mode<synchronous>, transform_indices = @transform_1, window_bounds = array<i64: 9, 3, 64>}, {pipeline_mode = #tpu.pipeline_mode<synchronous>, transform_indices = @transform_2, window_bounds = array<i64: 1, 64>}, {transform_indices = @transform_3, window_bounds = array<i64: 1, 16, 16, 64>}]} {
    %c0 = arith.constant 0 : index
    %c0_0 = arith.constant 0 : index
    %c0_1 = arith.constant 0 : index
    %c0_2 = arith.constant 0 : index
    %c0_3 = arith.constant 0 : index
    %0 = vector.load %arg2[%c0, %c0_0, %c0_1, %c0_2, %c0_3] : memref<1x1x18x18x3xf32, #tpu.memory_space<vmem>>, vector<1x1x18x18x3xf32>
    %1 = vector.shape_cast %0 : vector<1x1x18x18x3xf32> to vector<18x18x3xf32>
    %2 = arith.truncf %1 : vector<18x18x3xf32> to vector<18x18x3xbf16>
    %cst = arith.constant 0.000000e+00 : f32
    %3 = vector.broadcast %cst : f32 to vector<256x64xf32>
    %4 = vector.extract_strided_slice %2 {offsets = [0, 0, 0], sizes = [16, 16, 3], strides = [1, 1, 1]} : vector<18x18x3xbf16> to vector<16x16x3xbf16>
    %5 = vector.shape_cast %4 : vector<16x16x3xbf16> to vector<256x3xbf16>
    %c0_4 = arith.constant 0 : index
    %c0_5 = arith.constant 0 : index
    %c0_6 = arith.constant 0 : index
    %6 = vector.load %arg3[%c0_4, %c0_5, %c0_6] : memref<9x3x64xbf16, #tpu.memory_space<vmem>>, vector<1x3x64xbf16>
    %7 = vector.shape_cast %6 : vector<1x3x64xbf16> to vector<3x64xbf16>
    %cst_7 = arith.constant dense<0.000000e+00> : vector<256x64xf32>
    %8 = tpu.matmul %5, %7, %cst_7 {dimension_numbers = #tpu.dot_dimension_numbers<[1], [0], [0], [1], [0, 0, 1, 1], [], []>} : vector<256x3xbf16>, vector<3x64xbf16>, vector<256x64xf32> -> vector<256x64xf32>
    %9 = arith.addf %3, %8 : vector<256x64xf32>
    %10 = vector.extract_strided_slice %2 {offsets = [0, 1, 0], sizes = [16, 16, 3], strides = [1, 1, 1]} : vector<18x18x3xbf16> to vector<16x16x3xbf16>
    %11 = vector.shape_cast %10 : vector<16x16x3xbf16> to vector<256x3xbf16>
    %c1 = arith.constant 1 : index
    %c0_8 = arith.constant 0 : index
    %c0_9 = arith.constant 0 : index
    %12 = vector.load %arg3[%c1, %c0_8, %c0_9] : memref<9x3x64xbf16, #tpu.memory_space<vmem>>, vector<1x3x64xbf16>
    %13 = vector.shape_cast %12 : vector<1x3x64xbf16> to vector<3x64xbf16>
    %cst_10 = arith.constant dense<0.000000e+00> : vector<256x64xf32>
    %14 = tpu.matmul %11, %13, %cst_10 {dimension_numbers = #tpu.dot_dimension_numbers<[1], [0], [0], [1], [0, 0, 1, 1], [], []>} : vector<256x3xbf16>, vector<3x64xbf16>, vector<256x64xf32> -> vector<256x64xf32>
    %15 = arith.addf %9, %14 : vector<256x64xf32>
    %16 = vector.extract_strided_slice %2 {offsets = [0, 2, 0], sizes = [16, 16, 3], strides = [1, 1, 1]} : vector<18x18x3xbf16> to vector<16x16x3xbf16>
    %17 = vector.shape_cast %16 : vector<16x16x3xbf16> to vector<256x3xbf16>
    %c2 = arith.constant 2 : index
    %c0_11 = arith.constant 0 : index
    %c0_12 = arith.constant 0 : index
    %18 = vector.load %arg3[%c2, %c0_11, %c0_12] : memref<9x3x64xbf16, #tpu.memory_space<vmem>>, vector<1x3x64xbf16>
    %19 = vector.shape_cast %18 : vector<1x3x64xbf16> to vector<3x64xbf16>
    %cst_13 = arith.constant dense<0.000000e+00> : vector<256x64xf32>
    %20 = tpu.matmul %17, %19, %cst_13 {dimension_numbers = #tpu.dot_dimension_numbers<[1], [0], [0], [1], [0, 0, 1, 1], [], []>} : vector<256x3xbf16>, vector<3x64xbf16>, vector<256x64xf32> -> vector<256x64xf32>
    %21 = arith.addf %15, %20 : vector<256x64xf32>
    %22 = vector.extract_strided_slice %2 {offsets = [1, 0, 0], sizes = [16, 16, 3], strides = [1, 1, 1]} : vector<18x18x3xbf16> to vector<16x16x3xbf16>
    %23 = vector.shape_cast %22 : vector<16x16x3xbf16> to vector<256x3xbf16>
    %c3 = arith.constant 3 : index
    %c0_14 = arith.constant 0 : index
    %c0_15 = arith.constant 0 : index
    %24 = vector.load %arg3[%c3, %c0_14, %c0_15] : memref<9x3x64xbf16, #tpu.memory_space<vmem>>, vector<1x3x64xbf16>
    %25 = vector.shape_cast %24 : vector<1x3x64xbf16> to vector<3x64xbf16>
    %cst_16 = arith.constant dense<0.000000e+00> : vector<256x64xf32>
    %26 = tpu.matmul %23, %25, %cst_16 {dimension_numbers = #tpu.dot_dimension_numbers<[1], [0], [0], [1], [0, 0, 1, 1], [], []>} : vector<256x3xbf16>, vector<3x64xbf16>, vector<256x64xf32> -> vector<256x64xf32>
    %27 = arith.addf %21, %26 : vector<256x64xf32>
    %28 = vector.extract_strided_slice %2 {offsets = [1, 1, 0], sizes = [16, 16, 3], strides = [1, 1, 1]} : vector<18x18x3xbf16> to vector<16x16x3xbf16>
    %29 = vector.shape_cast %28 : vector<16x16x3xbf16> to vector<256x3xbf16>
    %c4 = arith.constant 4 : index
    %c0_17 = arith.constant 0 : index
    %c0_18 = arith.constant 0 : index
    %30 = vector.load %arg3[%c4, %c0_17, %c0_18] : memref<9x3x64xbf16, #tpu.memory_space<vmem>>, vector<1x3x64xbf16>
    %31 = vector.shape_cast %30 : vector<1x3x64xbf16> to vector<3x64xbf16>
    %cst_19 = arith.constant dense<0.000000e+00> : vector<256x64xf32>
    %32 = tpu.matmul %29, %31, %cst_19 {dimension_numbers = #tpu.dot_dimension_numbers<[1], [0], [0], [1], [0, 0, 1, 1], [], []>} : vector<256x3xbf16>, vector<3x64xbf16>, vector<256x64xf32> -> vector<256x64xf32>
    %33 = arith.addf %27, %32 : vector<256x64xf32>
    %34 = vector.extract_strided_slice %2 {offsets = [1, 2, 0], sizes = [16, 16, 3], strides = [1, 1, 1]} : vector<18x18x3xbf16> to vector<16x16x3xbf16>
    %35 = vector.shape_cast %34 : vector<16x16x3xbf16> to vector<256x3xbf16>
    %c5 = arith.constant 5 : index
    %c0_20 = arith.constant 0 : index
    %c0_21 = arith.constant 0 : index
    %36 = vector.load %arg3[%c5, %c0_20, %c0_21] : memref<9x3x64xbf16, #tpu.memory_space<vmem>>, vector<1x3x64xbf16>
    %37 = vector.shape_cast %36 : vector<1x3x64xbf16> to vector<3x64xbf16>
    %cst_22 = arith.constant dense<0.000000e+00> : vector<256x64xf32>
    %38 = tpu.matmul %35, %37, %cst_22 {dimension_numbers = #tpu.dot_dimension_numbers<[1], [0], [0], [1], [0, 0, 1, 1], [], []>} : vector<256x3xbf16>, vector<3x64xbf16>, vector<256x64xf32> -> vector<256x64xf32>
    %39 = arith.addf %33, %38 : vector<256x64xf32>
    %40 = vector.extract_strided_slice %2 {offsets = [2, 0, 0], sizes = [16, 16, 3], strides = [1, 1, 1]} : vector<18x18x3xbf16> to vector<16x16x3xbf16>
    %41 = vector.shape_cast %40 : vector<16x16x3xbf16> to vector<256x3xbf16>
    %c6 = arith.constant 6 : index
    %c0_23 = arith.constant 0 : index
    %c0_24 = arith.constant 0 : index
    %42 = vector.load %arg3[%c6, %c0_23, %c0_24] : memref<9x3x64xbf16, #tpu.memory_space<vmem>>, vector<1x3x64xbf16>
    %43 = vector.shape_cast %42 : vector<1x3x64xbf16> to vector<3x64xbf16>
    %cst_25 = arith.constant dense<0.000000e+00> : vector<256x64xf32>
    %44 = tpu.matmul %41, %43, %cst_25 {dimension_numbers = #tpu.dot_dimension_numbers<[1], [0], [0], [1], [0, 0, 1, 1], [], []>} : vector<256x3xbf16>, vector<3x64xbf16>, vector<256x64xf32> -> vector<256x64xf32>
    %45 = arith.addf %39, %44 : vector<256x64xf32>
    %46 = vector.extract_strided_slice %2 {offsets = [2, 1, 0], sizes = [16, 16, 3], strides = [1, 1, 1]} : vector<18x18x3xbf16> to vector<16x16x3xbf16>
    %47 = vector.shape_cast %46 : vector<16x16x3xbf16> to vector<256x3xbf16>
    %c7 = arith.constant 7 : index
    %c0_26 = arith.constant 0 : index
    %c0_27 = arith.constant 0 : index
    %48 = vector.load %arg3[%c7, %c0_26, %c0_27] : memref<9x3x64xbf16, #tpu.memory_space<vmem>>, vector<1x3x64xbf16>
    %49 = vector.shape_cast %48 : vector<1x3x64xbf16> to vector<3x64xbf16>
    %cst_28 = arith.constant dense<0.000000e+00> : vector<256x64xf32>
    %50 = tpu.matmul %47, %49, %cst_28 {dimension_numbers = #tpu.dot_dimension_numbers<[1], [0], [0], [1], [0, 0, 1, 1], [], []>} : vector<256x3xbf16>, vector<3x64xbf16>, vector<256x64xf32> -> vector<256x64xf32>
    %51 = arith.addf %45, %50 : vector<256x64xf32>
    %52 = vector.extract_strided_slice %2 {offsets = [2, 2, 0], sizes = [16, 16, 3], strides = [1, 1, 1]} : vector<18x18x3xbf16> to vector<16x16x3xbf16>
    %53 = vector.shape_cast %52 : vector<16x16x3xbf16> to vector<256x3xbf16>
    %c8 = arith.constant 8 : index
    %c0_29 = arith.constant 0 : index
    %c0_30 = arith.constant 0 : index
    %54 = vector.load %arg3[%c8, %c0_29, %c0_30] : memref<9x3x64xbf16, #tpu.memory_space<vmem>>, vector<1x3x64xbf16>
    %55 = vector.shape_cast %54 : vector<1x3x64xbf16> to vector<3x64xbf16>
    %cst_31 = arith.constant dense<0.000000e+00> : vector<256x64xf32>
    %56 = tpu.matmul %53, %55, %cst_31 {dimension_numbers = #tpu.dot_dimension_numbers<[1], [0], [0], [1], [0, 0, 1, 1], [], []>} : vector<256x3xbf16>, vector<3x64xbf16>, vector<256x64xf32> -> vector<256x64xf32>
    %57 = arith.addf %51, %56 : vector<256x64xf32>
    %c0_32 = arith.constant 0 : index
    %c0_33 = arith.constant 0 : index
    %58 = vector.load %arg4[%c0_32, %c0_33] : memref<1x64xf32, #tpu.memory_space<vmem>>, vector<1x64xf32>
    %59 = vector.shape_cast %58 : vector<1x64xf32> to vector<64xf32>
    %60 = vector.shape_cast %59 : vector<64xf32> to vector<1x64xf32>
    %61 = vector.broadcast %60 : vector<1x64xf32> to vector<256x64xf32>
    %62 = arith.addf %57, %61 : vector<256x64xf32>
    %cst_34 = arith.constant 0.000000e+00 : f32
    %63 = vector.broadcast %cst_34 : f32 to vector<256x64xf32>
    %64 = arith.maximumf %62, %63 : vector<256x64xf32>
    %65 = vector.shape_cast %64 : vector<256x64xf32> to vector<16x16x64xf32>
    %c0_35 = arith.constant 0 : index
    %c0_36 = arith.constant 0 : index
    %c0_37 = arith.constant 0 : index
    %c0_38 = arith.constant 0 : index
    %66 = vector.load %arg5[%c0_35, %c0_36, %c0_37, %c0_38] : memref<1x16x16x64xf32, #tpu.memory_space<vmem>>, vector<1x16x16x64xf32>
    %67 = vector.shape_cast %66 : vector<1x16x16x64xf32> to vector<16x16x64xf32>
    %68 = vector.shape_cast %65 : vector<16x16x64xf32> to vector<1x16x16x64xf32>
    tpu.vector_store %arg5[%c0_35, %c0_36, %c0_37, %c0_38], %68 {strides = array<i32>} : memref<1x16x16x64xf32, #tpu.memory_space<vmem>>, vector<1x16x16x64xf32>,
    return
  }
  func.func @transform_0(%arg0: i32, %arg1: i32) -> (i32, i32, i32, i32, i32) {
    %c0_i32 = arith.constant 0 : i32
    %c0_i32_0 = arith.constant 0 : i32
    %c0_i32_1 = arith.constant 0 : i32
    %c0_i32_2 = arith.constant 0 : i32
    return %arg0, %arg1, %c0_i32, %c0_i32_0, %c0_i32_1 : i32, i32, i32, i32, i32
  }
  func.func @transform_1(%arg0: i32, %arg1: i32) -> (i32, i32, i32) {
    %c0_i32 = arith.constant 0 : i32
    %c0_i32_0 = arith.constant 0 : i32
    %c0_i32_1 = arith.constant 0 : i32
    %c0_i32_2 = arith.constant 0 : i32
    return %c0_i32, %c0_i32_0, %c0_i32_1 : i32, i32, i32
  }
  func.func @transform_2(%arg0: i32, %arg1: i32) -> (i32, i32) {
    %c0_i32 = arith.constant 0 : i32
    %c0_i32_0 = arith.constant 0 : i32
    %c0_i32_1 = arith.constant 0 : i32
    return %c0_i32, %c0_i32_0 : i32, i32
  }
  func.func @transform_3(%arg0: i32, %arg1: i32) -> (i32, i32, i32, i32) {
    %c0_i32 = arith.constant 0 : i32
    %c0_i32_0 = arith.constant 0 : i32
    %c0_i32_1 = arith.constant 0 : i32
    return %arg0, %arg1, %c0_i32, %c0_i32_0 : i32, i32, i32, i32
  }
}

</mosaic_0001>

<bundles_post_ra>
// kernel: tpu_custom_call.1
= control target key start
LH: loop header
LB: loop body
LE: loop exit
PB: predicated region body
PF: predicated region fallthrough
CT: control target
= control target key end

     0   :  { %8 = vsyncpa [#allocation3], 0  ;;  %s4173_s0 = inlined_call_operand.vmem [shape: f32[4,1,18,18,3], index: 0, kind: input, shape index: {}]   ;;  %s4174_s1 = inlined_call_operand.vmem [shape: bf16[9,3,64], index: 1, kind: input, shape index: {}]   ;;  %s4175_s2 = inlined_call_operand.vmem [shape: f32[1,64], index: 2, kind: input, shape index: {}]   ;;  %s4176_s3 = inlined_call_operand.hbm [shape: f32[4,16,16,64], index: 3, kind: output, shape index: {}]  }
   0x1   :  { %10 = vsyncpa [#allocation3 + $0x1], 0  ;;  %s2874_s12 = smov 0   ;;  %s2876_s13 = smov 0  }
   0x2   :  { %s2878_s14 = smov 0   ;;  %s2880_s15 = smov 0  }
   0x3   :  { %s2882_s16 = smov 0   ;;  %s2884_s17 = smov 0  }
   0x4 LB: > { %s2525_s18 = sadd.s32 4294967295, %s2849_s17   ;;  %s2526_s19 = sadd.s32 4294967294, %s2849_s17   ;;  %s2849_s17 = sphi %s2884_s17, %s16_s17   ;;  %s2845_s16 = sphi %s2882_s16, %s4370_s16   ;;  %s2841_s15 = sphi %s2880_s15, %s4369_s15   ;;  %s2837_s14 = sphi %s2878_s14, %s4368_s14   ;;  %s2833_s13 = sphi %s2876_s13, %s4367_s13   ;;  %s2829_s12 = sphi %s2874_s12, %s4366_s12  }
   0x5   : > { %s28_s20 = sadd.s32 1, %s2845_s16  ;;  %s107_s21 = sadd.s32 1, %s2837_s14 }
   0x6   : > { %p30_p0 = scmp.ge.s32.totalorder %s28_s20, 4  ;;  %p117_p1 = scmp.ne.s32.totalorder %s2837_s14, %s2833_s13 }
   0x7   : > { %p118_p2 = scmp.eq.s32.totalorder %s2525_s18, 3  ;;  %p123_p3 = scmp.ne.s32.totalorder %s2833_s13, %s2829_s12 }
   0x8   : > { %s4372_s20 = smov (%p30_p0, %s28_s20), 0  ;;  %p124_p5 = scmp.eq.s32.totalorder %s2526_s19, 3 }
   0x9   : > { %p2914_p4 = por %p118_p2, %p117_p1  ;;  %s102_s23 = ssub.s32 %s2845_s16, %s4372_s20 }
   0xa   : > { %p2529_p6 = scmp.ge.s32.totalorder %s2849_s17, 1  ;;  %p105_p7 = scmp.eq.s32.totalorder %s102_s23, 0 }
   0xb   : > { %p2921_p8 = por %p124_p5, %p123_p3  ;;  %p160_p9 = scmp.lt.s32.totalorder %s2849_s17, 5 }
   0xc   : > { %s2927_s25 = scalar_select %p105_p7, %s2837_s14, %s107_s21  }
   0xd   : > { %p161_p10 = pnand %p2529_p6, %p160_p9 }
   0xf   : > { %164 = sbr.rel (%p161_p10) target bundleno = 783 (0x30f), region = 32 }
  0x14   : > { %v2532_v0 = vld [vmem:[%s4174_s1 + $0x2] sm:$0x3]  ;;  %vm794_vm0 = vcmask 1040384   ;;  %vm795_vm1 = vcmask 1041408   ;;  %p188_p11 = scmp.lt.s32.totalorder %s2841_s15, 3  ;;  %v2851_v1 = vmov 65535  }
  0x15   : > { %v796_v2 = vsel %vm794_vm0, 4294967295, %v2851_v1  ;;  %v2581_v4 = vld [vmem:[%s4174_s1 + $0x4] sm:$0x3]  ;;  %v2598_v7 = vld [vmem:[%s4174_s1 + $0x6] sm:$0x3]  ;;  %vm745_vm4 = vcmask 23552  }
  0x16   : > { %v2933_v3 = vsel %vm795_vm1, %v796_v2, 0  ;;  %s189_s28 = scalar_select %p188_p11, %s2841_s15, 3  ;;  %v307_v8 = vld [vmem:[%s4174_s1] sm:$0x3]  ;;  %v2615_v9 = vld [vmem:[%s4174_s1 + $0x8] sm:$0x3] }
  0x17   : > { %v799_v5 = vand.u32 %v2532_v0, %v2933_v3  ;;  %v1340_v6 = vand.u32 %v2581_v4, %v2933_v3  ;;  %v1474_v10 = vand.u32 %v2598_v7, %v2933_v3  ;;  %v1019_v11 = vand.u32 %v2933_v3, %v307_v8  ;;  %s185_s5 = sand.u32 1, %s2833_s13   ;;  %s2707_s10 = sshll.u32 %s2841_s15, 8 }
  0x18   : > { %s2711_s4 = smul.u32 432, %s189_s28  ;;  %v1630_v12 = vand.u32 %v2615_v9, %v2933_v3  ;;  %vm308_vm2 = vsmask.f32 3328  ;;  %vm309_vm3 = vsmask.f32 7440  ;;  %vm1126_vm6 = vcmask 1042432  }
  0x19   : > { %2708 = vmatpush.bf16.msra.mxu1 %v799_v5  ;;  %2709 = vmatpush.bf16.msra.mxu2 %v799_v5  ;;  %vm2991_vm5 = vmor %vm308_vm2, %vm309_vm3  ;;  %vm1127_vm7 = vcmask 1046532   ;;  %s2530_s8 = sshll.u32 %s185_s5, 8  ;;  %vm2391_vm9 = vcmask 523264   ;;  %s2425_s15 = scalar_lea.sflag [#allocation3], %s185_s5 }
  0x1a   : > { %2710 = vmatpush.bf16.msra.mxu3 %v799_v5  ;;  %808 = vmatpush.bf16.msra.mxu0 %v799_v5  ;;  %s2953_s19 = scalar_lea.vmem %s4173_s0, %s2711_s4  ;;  %vm3307_vm8 = vmor %vm1126_vm6, %vm1127_vm7  ;;  %s3930_s9 = scalar_lea.vmem [#allocation2], %s2530_s8 }
  0x1b   : > { %v211_v13 = vld [vmem:[%s2953_s19 + $0x60] sm:$0xff]  ;;  %v212_v14 = vld [vmem:[%s2953_s19 + $0x68] sm:$0xff]  ;;  %v213_v15 = vld [vmem:[%s2953_s19 + $0x70] sm:$0x3]  ;;  %s2440_s21 = sshll.u32 %s3930_s9, 4  ;;  %s2791_s30 = scalar_lea.hbm %s4176_s3, 1024  ;;  %s2441_s21 = int_to_ptr.vmem [resolvable:$true] %s2440_s21 }
  0x1c   : > { %v2961_v16 = vpack.c.bf16 %v211_v13, %v211_v13  ;;  %v2963_v17 = vpack.c.bf16 %v212_v14, %v212_v14  ;;  %v2965_v18 = vpack.c.bf16 %v213_v15, %v213_v15  ;;  %v223_v19 = vld [vmem:[%s2953_s19 + $0xc0] sm:$0xff]  ;;  %v224_v20 = vld [vmem:[%s2953_s19 + $0xc8] sm:$0xff]  ;;  %v225_v21 = vld [vmem:[%s2953_s19 + $0xd0] sm:$0x3] }
  0x1d   : > { %1349 = vmatpush.bf16.msrb.mxu2 %v1340_v6  ;;  %1028 = vmatpush.bf16.msrb.mxu1 %v1019_v11  ;;  %v2970_v22 = vpack.c.bf16 %v223_v19, %v223_v19  ;;  %v2972_v23 = vpack.c.bf16 %v224_v20, %v224_v20  ;;  %v2974_v24 = vpack.c.bf16 %v225_v21, %v225_v21  ;;  %v235_v33 = vld [vmem:[%s2953_s19 + $0x120] sm:$0xff]  ;;  %v236_v34 = vld [vmem:[%s2953_s19 + $0x128] sm:$0xff]  ;;  %v237_v39 = vld [vmem:[%s2953_s19 + $0x130] sm:$0x3] }
  0x1e   : > { %1483 = vmatpush.bf16.msrb.mxu3 %v1474_v10  ;;  %1639 = vmatpush.bf16.msrb.mxu0 %v1630_v12  ;;  %v408_v25 = vshrl.u32 %v2961_v16, 16  ;;  %v411_v26 = vshll.u32 %v2961_v16, 16  ;;  %v417_v27 = vshll.u32 %v2963_v17, 16  ;;  %v421_v28 = vshrl.u32 %v2963_v17, 16  ;;  %v199_v1 = vld [vmem:[%s2953_s19] sm:$0xff]  ;;  %v200_v7 = vld [vmem:[%s2953_s19 + $0x8] sm:$0xff] }
  0x1f   : > { %v427_v29 = vshll.u32 %v2965_v18, 16  ;;  %v504_v30 = vshrl.u32 %v2970_v22, 16  ;;  %v507_v31 = vshll.u32 %v2970_v22, 16  ;;  %v513_v32 = vshll.u32 %v2972_v23, 16  ;;  %v201_v8 = vld [vmem:[%s2953_s19 + $0x10] sm:$0x3] }
  0x20   : > { %v410_v35 = vrot.slane %v408_v25, 4  ;;  %v413_v36 = vrot.slane %v411_v26, 5  ;;  %v419_v37 = vrot.slane %v417_v27, 5  ;;  %v423_v38 = vrot.slane %v421_v28, 4 }
  0x21   : > { %v429_v40 = vrot.slane %v427_v29, 5  ;;  %v506_v41 = vrot.slane %v504_v30, 4  ;;  %v509_v42 = vrot.slane %v507_v31, 5  ;;  %v515_v43 = vrot.slane %v513_v32, 5 }
  0x22   : > { %v414_v44 = vor.u32 %v413_v36, %v410_v35  ;;  %v424_v45 = vor.u32 %v423_v38, %v419_v37  ;;  %v517_v46 = vshrl.u32 %v2972_v23, 16  ;;  %v523_v47 = vshll.u32 %v2974_v24, 16  ;;  %v214_v35 = vld [vmem:[%s2953_s19 + $0x78] sm:$0xff] }
  0x23   : > { %v510_v49 = vor.u32 %v509_v42, %v506_v41  ;;  %v2995_v50 = vpack.c.bf16 %v235_v33, %v235_v33  ;;  %v2997_v51 = vpack.c.bf16 %v236_v34, %v236_v34  ;;  %v2999_v52 = vpack.c.bf16 %v237_v39, %v237_v39 }
  0x24   : > { %v415_v53 = vrot.slane %v414_v44, 4  ;;  %v425_v54 = vrot.slane %v424_v45, 4  ;;  %v519_v55 = vrot.slane %v517_v46, 4  ;;  %v525_v56 = vrot.slane %v523_v47, 5  ;;  %v216_v45 = vld [vmem:[%s2953_s19 + $0x88] sm:$0x3] }
  0x25   : > { %4244 = vst [vmem:[#allocation5_spill] sm:$0xff] %v2995_v50  ;;  %v511_v57 = vrot.slane %v510_v49, 4  ;;  %v600_v58 = vshrl.u32 %v2995_v50, 16  ;;  %v603_v59 = vshll.u32 %v2995_v50, 16  ;;  %v609_v60 = vshll.u32 %v2997_v51, 16  ;;  %v226_v46 = vld [vmem:[%s2953_s19 + $0xd8] sm:$0xff] }
  0x26   : > { %4245 = vst [vmem:[#allocation6_spill] sm:$0xff] %v2997_v51  ;;  %v420_v61 = vsel %vm2991_vm5, %v415_v53, %v419_v37  ;;  %v430_v62 = vsel %vm2991_vm5, %v425_v54, %v429_v40  ;;  %v520_v63 = vor.u32 %v519_v55, %v515_v43  ;;  %v613_v0 = vshrl.u32 %v2997_v51, 16  ;;  %v215_v40 = vld [vmem:[%s2953_s19 + $0x80] sm:$0xff] }
  0x27   : > { %4246 = vst [vmem:[#allocation7_spill] sm:$0xff] %v2999_v52  ;;  %v705_v2 = vunpack.c.l.b16 %v420_v61  ;;  %v706_v4 = vunpack.c.l.b16 %v430_v62  ;;  %v516_v5 = vsel %vm2991_vm5, %v511_v57, %v515_v43  ;;  %v602_v6 = vrot.slane %v600_v58, 4  ;;  %v227_v62 = vld [vmem:[%s2953_s19 + $0xe0] sm:$0xff] }
  0x28   : > { %v521_v9 = vrot.slane %v520_v63, 4  ;;  %v713_v10 = vunpack.c.l.b16 %v516_v5  ;;  %v605_v11 = vrot.slane %v603_v59, 5  ;;  %v611_v12 = vrot.slane %v609_v60, 5 }
  0x29   : > { %v3014_v13 = vpack.c.b16 %v706_v4, %v705_v2  ;;  %v615_v14 = vrot.slane %v613_v0, 4  ;;  %v619_v15 = vshll.u32 %v2999_v52, 16  ;;  %v3017_v19 = vpack.c.bf16 %v199_v1, %v199_v1 }
  0x2a   : > { %v526_v20 = vsel %vm2991_vm5, %v521_v9, %v525_v56  ;;  %v606_v21 = vor.u32 %v605_v11, %v602_v6  ;;  %v3021_v25 = vpack.c.bf16 %v200_v7, %v200_v7  ;;  %v3023_v26 = vpack.c.bf16 %v201_v8, %v201_v8  ;;  %v228_v9 = vld [vmem:[%s2953_s19 + $0xe8] sm:$0x3] }
  0x2b   : > { %2537 = vmatmul.msk.bf16.vlgmr.msra.gmra.mxu1 %vm745_vm4, %v3014_v13  ;;  %v714_v27 = vunpack.c.l.b16 %v526_v20  ;;  %v616_v28 = vor.u32 %v615_v14, %v611_v12  ;;  %v621_v29 = vrot.slane %v619_v15, 5  ;;  %v312_v30 = vshrl.u32 %v3017_v19, 16 }
  0x2c   : > { %v607_v31 = vrot.slane %v606_v21, 4  ;;  %v315_v32 = vshll.u32 %v3017_v19, 16  ;;  %v321_v33 = vshll.u32 %v3021_v25, 16  ;;  %v325_v34 = vshrl.u32 %v3021_v25, 16 }
  0x2d   : > { %v3032_v36 = vpack.c.b16 %v714_v27, %v713_v10  ;;  %v617_v37 = vrot.slane %v616_v28, 4  ;;  %v314_v38 = vrot.slane %v312_v30, 4  ;;  %v331_v39 = vshll.u32 %v3023_v26, 16 }
  0x2e   : > { %v612_v41 = vsel %vm2991_vm5, %v607_v31, %v611_v12  ;;  %v317_v42 = vrot.slane %v315_v32, 5  ;;  %v323_v43 = vrot.slane %v321_v33, 5  ;;  %v327_v44 = vrot.slane %v325_v34, 4  ;;  %v238_v32 = vld [vmem:[%s2953_s19 + $0x138] sm:$0xff] }
  0x2f   : > { %4247 = vst [vmem:[#allocation8_spill] sm:$0xff] %v3032_v36  ;;  %2541 = vmatmul.msk.bf16.vlgmr.msra.gmra.mxu2 %vm745_vm4, %v3032_v36  ;;  %v622_v47 = vsel %vm2991_vm5, %v617_v37, %v621_v29  ;;  %v721_v49 = vunpack.c.l.b16 %v612_v41  ;;  %v333_v53 = vrot.slane %v331_v39, 5  ;;  %v3044_v54 = vpack.c.bf16 %v214_v35, %v214_v35 }
  0x30   : > { %v722_v55 = vunpack.c.l.b16 %v622_v47  ;;  %v318_v56 = vor.u32 %v317_v42, %v314_v38  ;;  %v328_v57 = vor.u32 %v327_v44, %v323_v43  ;;  %v3046_v58 = vpack.c.bf16 %v215_v40, %v215_v40  ;;  %v239_v38 = vld [vmem:[%s2953_s19 + $0x140] sm:$0xff] }
  0x31   : > { %v3048_v59 = vpack.c.bf16 %v216_v45, %v216_v45  ;;  %v432_v60 = vshrl.u32 %v3044_v54, 16  ;;  %v435_v61 = vshll.u32 %v3044_v54, 16  ;;  %v3053_v63 = vpack.c.bf16 %v226_v46, %v226_v46 }
  0x32   : > { %v3055_v0 = vpack.c.b16 %v722_v55, %v721_v49  ;;  %v319_v1 = vrot.slane %v318_v56, 4  ;;  %v329_v2 = vrot.slane %v328_v57, 4  ;;  %v441_v4 = vshll.u32 %v3046_v58, 16 }
  0x33   : > { %v434_v5 = vrot.slane %v432_v60, 4  ;;  %v437_v6 = vrot.slane %v435_v61, 5  ;;  %v445_v7 = vshrl.u32 %v3046_v58, 16  ;;  %v451_v8 = vshll.u32 %v3048_v59, 16 }
  0x34   : > { %4248 = vst [vmem:[#allocation9_spill] sm:$0xff] %v3055_v0  ;;  %2545 = vmatmul.msk.bf16.vlgmr.msra.gmra.mxu3 %vm745_vm4, %v3055_v0  ;;  %v324_v10 = vsel %vm2991_vm5, %v319_v1, %v323_v43  ;;  %v334_v11 = vsel %vm2991_vm5, %v329_v2, %v333_v53  ;;  %v443_v12 = vrot.slane %v441_v4, 5  ;;  %v3067_v14 = vpack.c.bf16 %v227_v62, %v227_v62  ;;  %v240_v43 = vld [vmem:[%s2953_s19 + $0x148] sm:$0x3] }
  0x35   : > { %v697_v15 = vunpack.c.l.b16 %v324_v10  ;;  %v698_v20 = vunpack.c.l.b16 %v334_v11  ;;  %v438_v21 = vor.u32 %v437_v6, %v434_v5  ;;  %v447_v27 = vrot.slane %v445_v7, 4  ;;  %v202_v10 = vld [vmem:[%s2953_s19 + $0x18] sm:$0xff]  ;;  %v203_v11 = vld [vmem:[%s2953_s19 + $0x20] sm:$0xff] }
  0x36   : > { %v453_v28 = vrot.slane %v451_v8, 5  ;;  %v3069_v29 = vpack.c.bf16 %v228_v9, %v228_v9  ;;  %v528_v30 = vshrl.u32 %v3053_v63, 16  ;;  %v531_v31 = vshll.u32 %v3053_v63, 16 }
  0x37   : > { %v729_v33 = vpack.c.b16 %v698_v20, %v697_v15  ;;  %v439_v34 = vrot.slane %v438_v21, 4  ;;  %v448_v35 = vor.u32 %v447_v27, %v443_v12  ;;  %v537_v37 = vshll.u32 %v3067_v14, 16  ;;  %v204_v27 = vld [vmem:[%s2953_s19 + $0x28] sm:$0x3] }
  0x38   : > { %v530_v39 = vrot.slane %v528_v30, 4  ;;  %v533_v40 = vrot.slane %v531_v31, 5  ;;  %v541_v41 = vshrl.u32 %v3067_v14, 16  ;;  %v547_v42 = vshll.u32 %v3069_v29, 16 }
  0x39   : > { %2533 = vmatmul.msk.bf16.vlgmr.msra.gmra.mxu0 %vm745_vm4, %v729_v33  ;;  %v444_v44 = vsel %vm2991_vm5, %v439_v34, %v443_v12  ;;  %v449_v45 = vrot.slane %v448_v35, 4  ;;  %v539_v46 = vrot.slane %v537_v37, 5  ;;  %v3082_v47 = vpack.c.bf16 %v238_v32, %v238_v32 }
  0x3a   : > { %v707_v49 = vunpack.c.l.b16 %v444_v44  ;;  %v534_v53 = vor.u32 %v533_v40, %v530_v39  ;;  %v543_v55 = vrot.slane %v541_v41, 4  ;;  %v549_v56 = vrot.slane %v547_v42, 5 }
  0x3b   : > { %4249 = vst [vmem:[#allocation10_spill] sm:$0xff] %v3082_v47  ;;  %v454_v57 = vsel %vm2991_vm5, %v449_v45, %v453_v28  ;;  %v3086_v60 = vpack.c.bf16 %v239_v38, %v239_v38  ;;  %v3088_v61 = vpack.c.bf16 %v240_v43, %v240_v43  ;;  %v624_v62 = vshrl.u32 %v3082_v47, 16  ;;  %v217_v28 = vld [vmem:[%s2953_s19 + $0x90] sm:$0xff] }
  0x3c   : > { %v708_v1 = vunpack.c.l.b16 %v454_v57  ;;  %v535_v2 = vrot.slane %v534_v53, 4  ;;  %v544_v4 = vor.u32 %v543_v55, %v539_v46  ;;  %v627_v5 = vshll.u32 %v3082_v47, 16  ;;  %v218_v57 = vld [vmem:[%s2953_s19 + $0x98] sm:$0xff] }
  0x3d   : > { %4250 = vst [vmem:[#allocation11_spill] sm:$0xff] %v3086_v60  ;;  %v626_v6 = vrot.slane %v624_v62, 4  ;;  %v633_v7 = vshll.u32 %v3086_v60, 16  ;;  %v637_v8 = vshrl.u32 %v3086_v60, 16  ;;  %v643_v9 = vshll.u32 %v3088_v61, 16 }
  0x3e   : > { %4251 = vst [vmem:[#allocation12_spill] sm:$0xff] %v3088_v61  ;;  %v3097_v12 = vpack.c.b16 %v708_v1, %v707_v49  ;;  %v540_v15 = vsel %vm2991_vm5, %v535_v2, %v539_v46  ;;  %v545_v20 = vrot.slane %v544_v4, 4  ;;  %v629_v21 = vrot.slane %v627_v5, 5  ;;  %v219_v62 = vld [vmem:[%s2953_s19 + $0xa0] sm:$0x3] }
  0x3f   : > { %v715_v30 = vunpack.c.l.b16 %v540_v15  ;;  %v635_v31 = vrot.slane %v633_v7, 5  ;;  %v639_v32 = vrot.slane %v637_v8, 4  ;;  %v645_v33 = vrot.slane %v643_v9, 5 }
  0x40   : > { %2538 = vmatmul.msk.bf16.gmra.mxu1 %vm745_vm4, %v3097_v12  ;;  %v550_v34 = vsel %vm2991_vm5, %v545_v20, %v549_v56  ;;  %v630_v35 = vor.u32 %v629_v21, %v626_v6  ;;  %v3107_v37 = vpack.c.bf16 %v202_v10, %v202_v10  ;;  %v3109_v38 = vpack.c.bf16 %v203_v11, %v203_v11  ;;  %v229_v6 = vld [vmem:[%s2953_s19 + $0xf0] sm:$0xff] }
  0x41   : > { %v716_v39 = vunpack.c.l.b16 %v550_v34  ;;  %v640_v40 = vor.u32 %v639_v32, %v635_v31  ;;  %v3111_v41 = vpack.c.bf16 %v204_v27, %v204_v27  ;;  %v3113_v42 = vpack.c.bf16 %v217_v28, %v217_v28 }
  0x42   : > { %v631_v43 = vrot.slane %v630_v35, 4  ;;  %v336_v44 = vshrl.u32 %v3107_v37, 16  ;;  %v339_v45 = vshll.u32 %v3107_v37, 16  ;;  %v345_v46 = vshll.u32 %v3109_v38, 16 }
  0x43   : > { %v3118_v49 = vpack.c.b16 %v716_v39, %v715_v30  ;;  %v641_v53 = vrot.slane %v640_v40, 4  ;;  %v349_v55 = vshrl.u32 %v3109_v38, 16  ;;  %v355_v56 = vshll.u32 %v3111_v41, 16 }
  0x44   : > { %v636_v1 = vsel %vm2991_vm5, %v631_v43, %v635_v31  ;;  %v338_v2 = vrot.slane %v336_v44, 4  ;;  %v341_v4 = vrot.slane %v339_v45, 5  ;;  %v347_v5 = vrot.slane %v345_v46, 5  ;;  %v230_v31 = vld [vmem:[%s2953_s19 + $0xf8] sm:$0xff]  ;;  %v231_v46 = vld [vmem:[%s2953_s19 + $0x100] sm:$0x3] }
  0x45   : > { %4252 = vst [vmem:[#allocation13_spill] sm:$0xff] %v3118_v49  ;;  %2542 = vmatmul.msk.bf16.gmra.mxu2 %vm745_vm4, %v3118_v49  ;;  %v646_v7 = vsel %vm2991_vm5, %v641_v53, %v645_v33  ;;  %v723_v8 = vunpack.c.l.b16 %v636_v1  ;;  %v351_v9 = vrot.slane %v349_v55, 4  ;;  %v357_v10 = vrot.slane %v355_v56, 5 }
  0x46   : > { %v724_v11 = vunpack.c.l.b16 %v646_v7  ;;  %v342_v15 = vor.u32 %v341_v4, %v338_v2  ;;  %v3131_v20 = vpack.c.bf16 %v218_v57, %v218_v57  ;;  %v3133_v21 = vpack.c.bf16 %v219_v62, %v219_v62 }
  0x47   : > { %v352_v27 = vor.u32 %v351_v9, %v347_v5  ;;  %v456_v28 = vshrl.u32 %v3113_v42, 16  ;;  %v459_v30 = vshll.u32 %v3113_v42, 16  ;;  %v3138_v32 = vpack.c.bf16 %v229_v6, %v229_v6 }
  0x48   : > { %v3140_v34 = vpack.c.b16 %v724_v11, %v723_v8  ;;  %v343_v33 = vrot.slane %v342_v15, 4  ;;  %v465_v35 = vshll.u32 %v3131_v20, 16  ;;  %v469_v39 = vshrl.u32 %v3131_v20, 16 }
  0x49   : > { %v353_v40 = vrot.slane %v352_v27, 4  ;;  %v458_v43 = vrot.slane %v456_v28, 4  ;;  %v461_v44 = vrot.slane %v459_v30, 5  ;;  %v475_v45 = vshll.u32 %v3133_v21, 16 }
  0x4a   : > { %4253 = vst [vmem:[#allocation14_spill] sm:$0xff] %v3140_v34  ;;  %2546 = vmatmul.msk.bf16.gmra.mxu3 %vm745_vm4, %v3140_v34  ;;  %v348_v53 = vsel %vm2991_vm5, %v343_v33, %v347_v5  ;;  %v467_v55 = vrot.slane %v465_v35, 5  ;;  %v471_v56 = vrot.slane %v469_v39, 4  ;;  %v3150_v57 = vpack.c.bf16 %v230_v31, %v230_v31  ;;  %v242_v35 = vld [vmem:[%s2953_s19 + $0x158] sm:$0xff] }
  0x4b   : > { %v358_v62 = vsel %vm2991_vm5, %v353_v40, %v357_v10  ;;  %v699_v1 = vunpack.c.l.b16 %v348_v53  ;;  %v462_v2 = vor.u32 %v461_v44, %v458_v43  ;;  %v477_v4 = vrot.slane %v475_v45, 5  ;;  %v241_v10 = vld [vmem:[%s2953_s19 + $0x150] sm:$0xff]  ;;  %v243_v45 = vld [vmem:[%s2953_s19 + $0x160] sm:$0x3] }
  0x4c   : > { %4254 = vst [vmem:[#allocation15_spill] sm:$0xff] %v3150_v57  ;;  %v700_v6 = vunpack.c.l.b16 %v358_v62  ;;  %v472_v7 = vor.u32 %v471_v56, %v467_v55  ;;  %v3154_v8 = vpack.c.bf16 %v231_v46, %v231_v46  ;;  %v552_v9 = vshrl.u32 %v3138_v32, 16  ;;  %v205_v46 = vld [vmem:[%s2953_s19 + $0x30] sm:$0xff] }
  0x4d   : > { %v463_v5 = vrot.slane %v462_v2, 4  ;;  %v555_v11 = vshll.u32 %v3138_v32, 16  ;;  %v561_v15 = vshll.u32 %v3150_v57, 16  ;;  %v565_v27 = vshrl.u32 %v3150_v57, 16 }
  0x4e   : > { %4255 = vst [vmem:[#allocation16_spill] sm:$0xff] %v3154_v8  ;;  %v3161_v28 = vpack.c.b16 %v700_v6, %v699_v1  ;;  %v473_v30 = vrot.slane %v472_v7, 4  ;;  %v554_v31 = vrot.slane %v552_v9, 4  ;;  %v571_v33 = vshll.u32 %v3154_v8, 16 }
  0x4f   : > { %v468_v39 = vsel %vm2991_vm5, %v463_v5, %v467_v55  ;;  %v557_v40 = vrot.slane %v555_v11, 5  ;;  %v563_v43 = vrot.slane %v561_v15, 5  ;;  %v567_v44 = vrot.slane %v565_v27, 4  ;;  %v206_v15 = vld [vmem:[%s2953_s19 + $0x38] sm:$0xff] }
  0x50   : > { %2534 = vmatmul.msk.bf16.gmra.mxu0 %vm745_vm4, %v3161_v28  ;;  %v478_v53 = vsel %vm2991_vm5, %v473_v30, %v477_v4  ;;  %v709_v56 = vunpack.c.l.b16 %v468_v39  ;;  %v573_v62 = vrot.slane %v571_v33, 5  ;;  %v3173_v1 = vpack.c.bf16 %v241_v10, %v241_v10 }
  0x51   : > { %v710_v2 = vunpack.c.l.b16 %v478_v53  ;;  %v558_v6 = vor.u32 %v557_v40, %v554_v31  ;;  %v568_v55 = vor.u32 %v567_v44, %v563_v43  ;;  %v3175_v7 = vpack.c.bf16 %v242_v35, %v242_v35  ;;  %v207_v44 = vld [vmem:[%s2953_s19 + $0x40] sm:$0x3] }
  0x52   : > { %4256 = vst [vmem:[#allocation17_spill] sm:$0xff] %v3173_v1  ;;  %v3177_v9 = vpack.c.bf16 %v243_v45, %v243_v45  ;;  %v648_v5 = vshrl.u32 %v3173_v1, 16  ;;  %v651_v11 = vshll.u32 %v3173_v1, 16  ;;  %v3182_v27 = vpack.c.bf16 %v205_v46, %v205_v46 }
  0x53   : > { %4257 = vst [vmem:[#allocation18_spill] sm:$0xff] %v3175_v7  ;;  %v3184_v4 = vpack.c.b16 %v710_v2, %v709_v56  ;;  %v559_v30 = vrot.slane %v558_v6, 4  ;;  %v569_v10 = vrot.slane %v568_v55, 4  ;;  %v657_v33 = vshll.u32 %v3175_v7, 16 }
  0x54   : > { %4258 = vst [vmem:[#allocation19_spill] sm:$0xff] %v3177_v9  ;;  %v650_v31 = vrot.slane %v648_v5, 4  ;;  %v653_v39 = vrot.slane %v651_v11, 5  ;;  %v661_v35 = vshrl.u32 %v3175_v7, 16  ;;  %v667_v40 = vshll.u32 %v3177_v9, 16 }
  0x55   : > { %2539 = vmatmul.msk.bf16.gmra.mxu1 %vm745_vm4, %v3184_v4  ;;  %v564_v45 = vsel %vm2991_vm5, %v559_v30, %v563_v43  ;;  %v574_v46 = vsel %vm2991_vm5, %v569_v10, %v573_v62  ;;  %v659_v53 = vrot.slane %v657_v33, 5  ;;  %v3196_v56 = vpack.c.bf16 %v206_v15, %v206_v15  ;;  %v220_v43 = vld [vmem:[%s2953_s19 + $0xa8] sm:$0xff]  ;;  %v221_v33 = vld [vmem:[%s2953_s19 + $0xb0] sm:$0xff] }
  0x56   : > { %v717_v2 = vunpack.c.l.b16 %v564_v45  ;;  %v718_v6 = vunpack.c.l.b16 %v574_v46  ;;  %v654_v55 = vor.u32 %v653_v39, %v650_v31  ;;  %v663_v5 = vrot.slane %v661_v35, 4  ;;  %v222_v35 = vld [vmem:[%s2953_s19 + $0xb8] sm:$0x3] }
  0x57   : > { %v669_v11 = vrot.slane %v667_v40, 5  ;;  %v3198_v9 = vpack.c.bf16 %v207_v44, %v207_v44  ;;  %v360_v7 = vshrl.u32 %v3182_v27, 16  ;;  %v363_v1 = vshll.u32 %v3182_v27, 16 }
  0x58   : > { %v3203_v30 = vpack.c.b16 %v718_v6, %v717_v2  ;;  %v655_v62 = vrot.slane %v654_v55, 4  ;;  %v664_v10 = vor.u32 %v663_v5, %v659_v53  ;;  %v369_v15 = vshll.u32 %v3196_v56, 16 }
  0x59   : > { %v362_v45 = vrot.slane %v360_v7, 4  ;;  %v365_v46 = vrot.slane %v363_v1, 5  ;;  %v373_v31 = vshrl.u32 %v3196_v56, 16  ;;  %v379_v39 = vshll.u32 %v3198_v9, 16 }
  0x5a   : > { %4259 = vst [vmem:[#allocation20_spill] sm:$0xff] %v3203_v30  ;;  %2543 = vmatmul.msk.bf16.gmra.mxu2 %vm745_vm4, %v3203_v30  ;;  %v660_v40 = vsel %vm2991_vm5, %v655_v62, %v659_v53  ;;  %v665_v44 = vrot.slane %v664_v10, 4  ;;  %v371_v2 = vrot.slane %v369_v15, 5  ;;  %v3214_v6 = vpack.c.bf16 %v220_v43, %v220_v43 }
  0x5b   : > { %v725_v55 = vunpack.c.l.b16 %v660_v40  ;;  %v366_v5 = vor.u32 %v365_v46, %v362_v45  ;;  %v375_v1 = vrot.slane %v373_v31, 4  ;;  %v381_v7 = vrot.slane %v379_v39, 5  ;;  %v233_v39 = vld [vmem:[%s2953_s19 + $0x110] sm:$0xff] }
  0x5c   : > { %v670_v34 = vsel %vm2991_vm5, %v665_v44, %v669_v11  ;;  %v3218_v61 = vpack.c.bf16 %v221_v33, %v221_v33  ;;  %v3220_v60 = vpack.c.bf16 %v222_v35, %v222_v35  ;;  %v480_v53 = vshrl.u32 %v3214_v6, 16  ;;  %v232_v33 = vld [vmem:[%s2953_s19 + $0x108] sm:$0xff] }
  0x5d   : > { %v726_v62 = vunpack.c.l.b16 %v670_v34  ;;  %v367_v43 = vrot.slane %v366_v5, 4  ;;  %v376_v10 = vor.u32 %v375_v1, %v371_v2  ;;  %v483_v15 = vshll.u32 %v3214_v6, 16  ;;  %v234_v5 = vld [vmem:[%s2953_s19 + $0x118] sm:$0x3]  ;;  %v244_v1 = vld [vmem:[%s2953_s19 + $0x168] sm:$0xff] }
  0x5e   : > { %v482_v45 = vrot.slane %v480_v53, 4  ;;  %v489_v46 = vshll.u32 %v3218_v61, 16  ;;  %v493_v31 = vshrl.u32 %v3218_v61, 16  ;;  %v499_v11 = vshll.u32 %v3220_v60, 16 }
  0x5f   : > { %v3229_v35 = vpack.c.b16 %v726_v62, %v725_v55  ;;  %v372_v40 = vsel %vm2991_vm5, %v367_v43, %v371_v2  ;;  %v377_v44 = vrot.slane %v376_v10, 4  ;;  %v485_v34 = vrot.slane %v483_v15, 5 }
  0x60   : > { %v701_v47 = vunpack.c.l.b16 %v372_v40  ;;  %v491_v0 = vrot.slane %v489_v46, 5  ;;  %v495_v53 = vrot.slane %v493_v31, 4  ;;  %v501_v52 = vrot.slane %v499_v11, 5 }
  0x61   : > { %4260 = vst [vmem:[#allocation21_spill] sm:$0xff] %v3229_v35  ;;  %2547 = vmatmul.msk.bf16.gmra.mxu3 %vm745_vm4, %v3229_v35  ;;  %v382_v51 = vsel %vm2991_vm5, %v377_v44, %v381_v7  ;;  %v486_v55 = vor.u32 %v485_v34, %v482_v45  ;;  %v3239_v62 = vpack.c.bf16 %v232_v33, %v232_v33  ;;  %v245_v44 = vld [vmem:[%s2953_s19 + $0x170] sm:$0xff]  ;;  %v246_v34 = vld [vmem:[%s2953_s19 + $0x178] sm:$0x3]  ;;  %v208_v35 = vld [vmem:[%s2953_s19 + $0x48] sm:$0xff] }
  0x62   : > { %v3241_v2 = vpack.c.bf16 %v233_v39, %v233_v39  ;;  %v702_v43 = vunpack.c.l.b16 %v382_v51  ;;  %v496_v10 = vor.u32 %v495_v53, %v491_v0  ;;  %v3243_v15 = vpack.c.bf16 %v234_v5, %v234_v5 }
  0x63   : > { %4261 = vst [vmem:[#allocation22_spill] sm:$0xff] %v3239_v62  ;;  %v3245_v46 = vpack.c.bf16 %v244_v1, %v244_v1  ;;  %v487_v31 = vrot.slane %v486_v55, 4  ;;  %v576_v11 = vshrl.u32 %v3239_v62, 16  ;;  %v579_v40 = vshll.u32 %v3239_v62, 16 }
  0x64   : > { %4262 = vst [vmem:[#allocation23_spill] sm:$0xff] %v3241_v2  ;;  %v585_v7 = vshll.u32 %v3241_v2, 16  ;;  %v3250_v45 = vpack.c.b16 %v702_v43, %v701_v47  ;;  %v497_v33 = vrot.slane %v496_v10, 4  ;;  %v589_v39 = vshrl.u32 %v3241_v2, 16 }
  0x65   : > { %4263 = vst [vmem:[#allocation24_spill] sm:$0xff] %v3243_v15  ;;  %v595_v51 = vshll.u32 %v3243_v15, 16  ;;  %v492_v5 = vsel %vm2991_vm5, %v487_v31, %v491_v0  ;;  %v578_v1 = vrot.slane %v576_v11, 4  ;;  %v581_v53 = vrot.slane %v579_v40, 5 }
  0x66   : > { %4264 = vst [vmem:[#allocation25_spill] sm:$0xff] %v3245_v46  ;;  %v587_v55 = vrot.slane %v585_v7, 5  ;;  %2535 = vmatmul.msk.bf16.gmra.mxu0 %vm745_vm4, %v3250_v45  ;;  %v502_v47 = vsel %vm2991_vm5, %v497_v33, %v501_v52  ;;  %v711_v43 = vunpack.c.l.b16 %v492_v5  ;;  %v591_v10 = vrot.slane %v589_v39, 4  ;;  %v209_v7 = vld [vmem:[%s2953_s19 + $0x50] sm:$0xff] }
  0x67   : > { %v597_v50 = vrot.slane %v595_v51, 5  ;;  %v712_v15 = vunpack.c.l.b16 %v502_v47  ;;  %v582_v2 = vor.u32 %v581_v53, %v578_v1  ;;  %v3263_v62 = vpack.c.bf16 %v245_v44, %v245_v44  ;;  %v210_v1 = vld [vmem:[%s2953_s19 + $0x58] sm:$0x3] }
  0x68   : > { %v3265_v0 = vpack.c.bf16 %v246_v34, %v246_v34  ;;  %v592_v31 = vor.u32 %v591_v10, %v587_v55  ;;  %v672_v11 = vshrl.u32 %v3245_v46, 16  ;;  %v675_v40 = vshll.u32 %v3245_v46, 16 }
  0x69   : > { %4265 = vst [vmem:[#allocation26_spill] sm:$0xff] %v3263_v62  ;;  %v3270_v30 = vpack.c.bf16 %v208_v35, %v208_v35  ;;  %v3272_v8 = vpack.c.b16 %v712_v15, %v711_v43  ;;  %v583_v52 = vrot.slane %v582_v2, 4  ;;  %v681_v33 = vshll.u32 %v3263_v62, 16 }
  0x6a   : > { %4266 = vst [vmem:[#allocation27_spill] sm:$0xff] %v3265_v0  ;;  %v685_v39 = vshrl.u32 %v3263_v62, 16  ;;  %v593_v51 = vrot.slane %v592_v31, 4  ;;  %v674_v44 = vrot.slane %v672_v11, 4  ;;  %v677_v5 = vrot.slane %v675_v40, 5 }
  0x6b   : > { %4267 = vst [vmem:[#allocation28_spill] sm:$0xff] %v3272_v8  ;;  %v691_v34 = vshll.u32 %v3265_v0, 16  ;;  %2540 = vmatmul.msk.bf16.gmra.mxu1 %vm745_vm4, %v3272_v8  ;;  %v588_v35 = vsel %vm2991_vm5, %v583_v52, %v587_v55  ;;  %v683_v53 = vrot.slane %v681_v33, 5  ;;  %v3282_v47 = vpack.c.bf16 %v209_v7, %v209_v7 }
  0x6c   : > { %v687_v15 = vrot.slane %v685_v39, 4  ;;  %v598_v2 = vsel %vm2991_vm5, %v593_v51, %v597_v50  ;;  %v719_v43 = vunpack.c.l.b16 %v588_v35  ;;  %v678_v10 = vor.u32 %v677_v5, %v674_v44 }
  0x6d   : > { %v693_v31 = vrot.slane %v691_v34, 5  ;;  %v720_v11 = vunpack.c.l.b16 %v598_v2  ;;  %v3286_v0 = vpack.c.bf16 %v210_v1, %v210_v1  ;;  %v384_v62 = vshrl.u32 %v3270_v30, 16 }
  0x6e   : > { %v688_v40 = vor.u32 %v687_v15, %v683_v53  ;;  %v679_v46 = vrot.slane %v678_v10, 4  ;;  %v387_v57 = vshll.u32 %v3270_v30, 16  ;;  %v393_v55 = vshll.u32 %v3282_v47, 16 }
  0x6f   : > { %v397_v7 = vshrl.u32 %v3282_v47, 16  ;;  %v3292_v52 = vpack.c.b16 %v720_v11, %v719_v43  ;;  %v386_v50 = vrot.slane %v384_v62, 4  ;;  %v403_v39 = vshll.u32 %v3286_v0, 16 }
  0x70   : > { %v689_v33 = vrot.slane %v688_v40, 4  ;;  %v684_v51 = vsel %vm2991_vm5, %v679_v46, %v683_v53  ;;  %v389_v44 = vrot.slane %v387_v57, 5  ;;  %v395_v5 = vrot.slane %v393_v55, 5 }
  0x71   : > { %4268 = vst [vmem:[#allocation29_spill] sm:$0xff] %v3292_v52  ;;  %v399_v34 = vrot.slane %v397_v7, 4  ;;  %2544 = vmatmul.msk.bf16.gmra.mxu2 %vm745_vm4, %v3292_v52  ;;  %v727_v35 = vunpack.c.l.b16 %v684_v51  ;;  %v405_v15 = vrot.slane %v403_v39, 5  ;;  %v922_v2 = vunpack.c.l.b16 %v3017_v19  ;;  %v2667_v51 = vld [vmem:[%s4174_s1 + $0xe] sm:$0x3] }
  0x72   : > { %v694_v1 = vsel %vm2991_vm5, %v689_v33, %v693_v31  ;;  %v390_v62 = vor.u32 %v389_v44, %v386_v50  ;;  %v923_v11 = vunpack.c.l.b16 %v3021_v25  ;;  %v2565_v57 = vrot.slane %v3017_v19, 9  ;;  %v2650_v33 = vld [vmem:[%s4174_s1 + $0xc] sm:$0x3]  ;;  %v2633_v44 = vld [vmem:[%s4174_s1 + $0xa] sm:$0x3] }
  0x73   : > { %v728_v43 = vunpack.c.l.b16 %v694_v1  ;;  %v400_v10 = vor.u32 %v399_v34, %v395_v5  ;;  %v1131_v46 = vrot.slane %v3021_v25, 5  ;;  %v1134_v19 = vrot.slane %v3023_v26, 5 }
  0x74   : > { %v391_v40 = vrot.slane %v390_v62, 4  ;;  %v954_v31 = vpack.c.b16 %v923_v11, %v922_v2  ;;  %v924_v25 = vunpack.c.l.b16 %v3107_v37  ;;  %v2685_v2 = vld [vmem:[%s4174_s1 + $0x10] sm:$0x3]  ;;  %v1904_v11 = vand.u32 %v2650_v33, %v2933_v3 }
  0x75   : > { %v3305_v53 = vpack.c.b16 %v728_v43, %v727_v35  ;;  %v401_v55 = vrot.slane %v400_v10, 4  ;;  %v1132_v50 = vsel %vm3307_vm8, %v2565_v57, %v1131_v46  ;;  %v1133_v39 = vrot.slane %v1131_v46, 4 }
  0x76   : > { %v396_v34 = vsel %vm2991_vm5, %v391_v40, %v395_v5  ;;  %v1243_v26 = vunpack.c.l.b16 %v1132_v50  ;;  %v925_v35 = vunpack.c.l.b16 %v3109_v38  ;;  %v2060_v5 = vand.u32 %v2667_v51, %v2933_v3  ;;  %1913 = vmatpush.bf16.msra.mxu2 %v1904_v11 }
  0x77   : > { %2548 = vmatmul.msk.bf16.gmra.mxu3 %vm745_vm4, %v3305_v53  ;;  %v406_v1 = vsel %vm2991_vm5, %v401_v55, %v405_v15  ;;  %v703_v43 = vunpack.c.l.b16 %v396_v34  ;;  %v1135_v10 = vsel %vm3307_vm8, %v1133_v39, %v1134_v19  ;;  %v1770_v15 = vand.u32 %v2633_v44, %v2933_v3 }
  0x78   : > { %v704_v62 = vunpack.c.l.b16 %v406_v1  ;;  %v1244_v57 = vunpack.c.l.b16 %v1135_v10  ;;  %v955_v46 = vpack.c.b16 %v925_v35, %v924_v25  ;;  %v2200_v55 = vand.u32 %v2685_v2, %v2933_v3  ;;  %2069 = vmatpush.bf16.msra.mxu3 %v2060_v5 }
  0x79   : > { %v2566_v50 = vrot.slane %v3107_v37, 9  ;;  %v1138_v34 = vrot.slane %v3109_v38, 5  ;;  %1779 = vmatpush.bf16.msra.mxu1 %v1770_v15  ;;  %v1141_v39 = vrot.slane %v3111_v41, 5  ;;  %v2567_v25 = vrot.slane %v3182_v27, 9 }
  0x7a   : > { %v3339_v40 = vpack.c.b16 %v704_v62, %v703_v43  ;;  %v1145_v3 = vrot.slane %v3196_v56, 5  ;;  %2209 = vmatpush.bf16.msra.mxu0 %v2200_v55  ;;  %v1148_v38 = vrot.slane %v3198_v9, 5  ;;  %v1275_v51 = vpack.c.b16 %v1244_v57, %v1243_v26 }
  0x7b   : > { %2549 = vmatmul.msk.bf16.vlgmr.msrb.gmra.mxu1 %vm745_vm4, %v954_v31  ;;  %v1139_v33 = vsel %vm3307_vm8, %v2566_v50, %v1138_v34  ;;  %v1140_v19 = vrot.slane %v1138_v34, 4  ;;  %v926_v9 = vunpack.c.l.b16 %v3182_v27  ;;  %v927_v26 = vunpack.c.l.b16 %v3196_v56 }
  0x7c   : > { %2536 = vmatmul.msk.bf16.gmra.mxu0 %vm745_vm4, %v3339_v40  ;;  %v1245_v37 = vunpack.c.l.b16 %v1139_v33  ;;  %v1146_v44 = vsel %vm3307_vm8, %v2567_v25, %v1145_v3  ;;  %v1147_v31 = vrot.slane %v1145_v3, 4  ;;  %v929_v27 = vunpack.c.l.b16 %v3282_v47 }
  0x7d   : > { %v1142_v41 = vsel %vm3307_vm8, %v1140_v19, %v1141_v39  ;;  %v1247_v35 = vunpack.c.l.b16 %v1146_v44  ;;  %v3372_v11 = vpack.c.b16 %v927_v26, %v926_v9  ;;  %v1152_v56 = vrot.slane %v3282_v47, 5 }
  0x7e   : > { %v1246_v1 = vunpack.c.l.b16 %v1142_v41  ;;  %v1149_v2 = vsel %vm3307_vm8, %v1147_v31, %v1148_v38  ;;  %v1155_v15 = vrot.slane %v3286_v0, 5  ;;  %v930_v39 = vunpack.c.l.b16 %v2961_v16 }
  0x7f   : > { %v1248_v62 = vunpack.c.l.b16 %v1149_v2  ;;  %v1154_v5 = vrot.slane %v1152_v56, 4  ;;  %v931_v33 = vunpack.c.l.b16 %v2963_v17  ;;  %v1159_v19 = vrot.slane %v2963_v17, 5 }
  0x80   : > { %v3359_v43 = vpack.c.b16 %v1246_v1, %v1245_v37  ;;  %v2569_v3 = vrot.slane %v2961_v16, 9  ;;  %v1162_v38 = vrot.slane %v2965_v18, 5  ;;  %v932_v2 = vunpack.c.l.b16 %v3044_v54 }
  0x81   : > { %2582 = vmatmul.msk.bf16.vlgmr.msrb.gmra.mxu2 %vm745_vm4, %v1275_v51  ;;  %v3362_v10 = vpack.c.b16 %v1248_v62, %v1247_v35  ;;  %v1156_v50 = vsel %vm3307_vm8, %v1154_v5, %v1155_v15  ;;  %v3408_v25 = vpack.c.b16 %v931_v33, %v930_v39  ;;  %v1161_v37 = vrot.slane %v1159_v19, 4 }
  0x82   : > { %v1250_v34 = vunpack.c.l.b16 %v1156_v50  ;;  %v1160_v51 = vsel %vm3307_vm8, %v2569_v3, %v1159_v19  ;;  %v933_v62 = vunpack.c.l.b16 %v3046_v58  ;;  %v1166_v9 = vrot.slane %v3046_v58, 5 }
  0x83   : > { %v1163_v41 = vsel %vm3307_vm8, %v1161_v37, %v1162_v38  ;;  %v1251_v31 = vunpack.c.l.b16 %v1160_v51  ;;  %v1169_v5 = vrot.slane %v3048_v59, 5  ;;  %v934_v33 = vunpack.c.l.b16 %v3113_v42 }
  0x84   : > { %v1252_v1 = vunpack.c.l.b16 %v1163_v41  ;;  %v935_v19 = vunpack.c.l.b16 %v3131_v20  ;;  %v1173_v3 = vrot.slane %v3131_v20, 5  ;;  %v2571_v41 = vrot.slane %v3113_v42, 9 }
  0x86   : > { %v3428_v18 = vpack.c.b16 %v1252_v1, %v1251_v31  ;;  %v3474_v51 = vpack.c.b16 %v935_v19, %v934_v33  ;;  %v1175_v31 = vrot.slane %v1173_v3, 4  ;;  %v1176_v1 = vrot.slane %v3133_v21, 5 }
  0x87   : > { %2599 = vmatmul.msk.bf16.vlgmr.msrb.gmra.mxu3 %vm745_vm4, %v955_v46 }
  0x8b   : > { %2550 = vmatmul.msk.bf16.gmra.mxu1 %vm745_vm4, %v955_v46  ;;  %v2568_v46 = vrot.slane %v3270_v30, 9 }
  0x8c   : > { %2616 = vmatmul.msk.bf16.vlgmr.msrb.gmra.mxu0 %vm745_vm4, %v3161_v28  ;;  %v928_v28 = vunpack.c.l.b16 %v3270_v30 }
  0x8d   : > { %v1153_v55 = vsel %vm3307_vm8, %v2568_v46, %v1152_v56  ;;  %v2570_v56 = vrot.slane %v3044_v54, 9  ;;  %v1168_v46 = vrot.slane %v1166_v9, 4 }
  0x8e   : > { %v3385_v57 = vpack.c.b16 %v929_v27, %v928_v28  ;;  %v1249_v47 = vunpack.c.l.b16 %v1153_v55  ;;  %v3439_v28 = vpack.c.b16 %v933_v62, %v932_v2  ;;  %v1174_v62 = vsel %vm3307_vm8, %v2571_v41, %v1173_v3 }
  0x8f   : > { %v1167_v58 = vsel %vm3307_vm8, %v2570_v56, %v1166_v9  ;;  %v1170_v55 = vsel %vm3307_vm8, %v1168_v46, %v1169_v5  ;;  %v1177_v9 = vsel %vm3307_vm8, %v1175_v31, %v1176_v1  ;;  %v1255_v56 = vunpack.c.l.b16 %v1174_v62 }
  0x90   : > { %v3401_v0 = vpack.c.b16 %v1250_v34, %v1249_v47  ;;  %v1253_v47 = vunpack.c.l.b16 %v1167_v58  ;;  %v1254_v34 = vunpack.c.l.b16 %v1170_v55  ;;  %v1256_v46 = vunpack.c.l.b16 %v1177_v9 }
  0x91   : > { %2583 = vmatmul.msk.bf16.gmra.mxu2 %vm745_vm4, %v3359_v43  ;;  %v936_v58 = vunpack.c.l.b16 %v3214_v6  ;;  %v937_v55 = vunpack.c.l.b16 %v3218_v61  ;;  %v2572_v3 = vrot.slane %v3214_v6, 9  ;;  %v1183_v31 = vrot.slane %v3220_v60, 5 }
  0x92   : > { %v3463_v59 = vpack.c.b16 %v1254_v34, %v1253_v47  ;;  %v3496_v21 = vpack.c.b16 %v1256_v46, %v1255_v56  ;;  %v1180_v34 = vrot.slane %v3218_v61, 5 }
  0x93   : > { %v3507_v19 = vpack.c.b16 %v937_v55, %v936_v58 }
  0x94   : > { %v1182_v41 = vrot.slane %v1180_v34, 4  ;;  %v1181_v61 = vsel %vm3307_vm8, %v2572_v3, %v1180_v34  ;;  %v938_v34 = vunpack.c.l.b16 %v2970_v22  ;;  %v939_v3 = vunpack.c.l.b16 %v2972_v23 }
  0x95   : > { %4274 = vst [vmem:[#allocation33_spill] sm:$0xff] %v3507_v19  ;;  %v1257_v46 = vunpack.c.l.b16 %v1181_v61 }
  0x96   : > { %v1184_v9 = vsel %vm3307_vm8, %v1182_v41, %v1183_v31  ;;  %v1187_v41 = vrot.slane %v2972_v23, 5 }
  0x97   : > { %2600 = vmatmul.msk.bf16.gmra.mxu3 %vm745_vm4, %v3372_v11  ;;  %v1258_v6 = vunpack.c.l.b16 %v1184_v9  ;;  %v3542_v9 = vpack.c.b16 %v939_v3, %v938_v34 }
  0x99   : > { %v3529_v60 = vpack.c.b16 %v1258_v6, %v1257_v46  ;;  %4278 = vst [vmem:[#allocation37_spill] sm:$0xff] %v3542_v9  ;;  %v2573_v46 = vrot.slane %v2970_v22, 9  ;;  %v1189_v6 = vrot.slane %v1187_v41, 4 }
  0x9b   : > { %2551 = vmatmul.msk.bf16.gmra.mxu1 %vm745_vm4, %v3372_v11  ;;  %4276 = vst [vmem:[#allocation35_spill] sm:$0xff] %v3529_v60  ;;  %v1188_v23 = vsel %vm3307_vm8, %v2573_v46, %v1187_v41  ;;  %v941_v46 = vunpack.c.l.b16 %v3067_v14 }
  0x9c   : > { %2617 = vmatmul.msk.bf16.gmra.mxu0 %vm745_vm4, %v3250_v45 }
  0xa1   : > { %2584 = vmatmul.msk.bf16.gmra.mxu2 %vm745_vm4, %v3362_v10 }
  0xa7   : > { %2601 = vmatmul.msk.bf16.gmra.mxu3 %vm745_vm4, %v3385_v57 }
  0xa8   : > { %v3399_v30 = vpop.f32.mrf.mxu1 }
  0xab   : > { %2552 = vmatmul.msk.bf16.gmra.mxu1 %vm745_vm4, %v3385_v57 }
  0xac   : > { %2618 = vmatmul.msk.bf16.gmra.mxu0 %vm745_vm4, %v3339_v40 }
  0xb0   : > { %v3418_v17 = vpop.f32.mrf.mxu1 }
  0xb1   : > { %2585 = vmatmul.msk.bf16.gmra.mxu2 %vm745_vm4, %v3401_v0 }
  0xb2   : > { %v3420_v44 = vpop.f32.mrf.mxu2 }
  0xb6   : > { %v3426_v16 = vpop.f32.mrf.mxu0 }
  0xb7   : > { %2602 = vmatmul.msk.bf16.gmra.mxu3 %vm745_vm4, %v3408_v25  ;;  %v3430_v35 = vpop.f32.mrf.mxu3 }
  0xba   : > { %v3441_v27 = vpop.f32.mrf.mxu2 }
  0xbb   : > { %2553 = vmatmul.msk.bf16.gmra.mxu1 %vm745_vm4, %v3408_v25 }
  0xbc   : > { %2619 = vmatmul.msk.bf16.gmra.mxu0 %vm745_vm4, %v3014_v13 }
  0xbd   : > { %v3435_v26 = vpop.f32.mrf.mxu1 }
  0xbe   : > { %v3447_v15 = vpop.f32.mrf.mxu0 }
  0xbf   : > { %v3453_v50 = vpop.f32.mrf.mxu3 }
  0xc0   : > { %4271 = vst [vmem:[#allocation30_spill] sm:$0xff] %v3453_v50 }
  0xc1   : > { %2586 = vmatmul.msk.bf16.gmra.mxu2 %vm745_vm4, %v3428_v18 }
  0xc5   : > { %v3455_v39 = vpop.f32.mrf.mxu1 }
  0xc7   : > { %2603 = vmatmul.msk.bf16.gmra.mxu3 %vm745_vm4, %v3439_v28 }
  0xc8   : > { %v3461_v54 = vpop.f32.mrf.mxu2 }
  0xcb   : > { %2554 = vmatmul.msk.bf16.gmra.mxu1 %vm745_vm4, %v3439_v28 }
  0xcc   : > { %2620 = vmatmul.msk.bf16.gmra.mxu0 %vm745_vm4, %v3097_v12 }
  0xcd   : > { %v3468_v37 = vpop.f32.mrf.mxu0  ;;  %v3472_v38 = vpop.f32.mrf.mxu3 }
  0xce   : > { %4272 = vst [vmem:[#allocation31_spill] sm:$0xff] %v3472_v38 }
  0xd0   : > { %v3482_v20 = vpop.f32.mrf.mxu2 }
  0xd1   : > { %2587 = vmatmul.msk.bf16.gmra.mxu2 %vm745_vm4, %v3463_v59 }
  0xd2   : > { %v3478_v2 = vpop.f32.mrf.mxu1 }
  0xd5   : > { %v3488_v5 = vpop.f32.mrf.mxu0  ;;  %v3492_v42 = vpop.f32.mrf.mxu3 }
  0xd6   : > { %4273 = vst [vmem:[#allocation32_spill] sm:$0xff] %v3492_v42 }
  0xd7   : > { %2604 = vmatmul.msk.bf16.gmra.mxu3 %vm745_vm4, %v3474_v51 }
  0xda   : > { %v3500_v47 = vpop.f32.mrf.mxu1 }
  0xdb   : > { %2555 = vmatmul.msk.bf16.gmra.mxu1 %vm745_vm4, %v3474_v51 }
  0xdc   : > { %2621 = vmatmul.msk.bf16.gmra.mxu0 %vm745_vm4, %v3184_v4 }
  0xdd   : > { %v3503_v33 = vpop.f32.mrf.mxu2 }
  0xe1   : > { %2588 = vmatmul.msk.bf16.gmra.mxu2 %vm745_vm4, %v3496_v21 }
  0xe3   : > { %v3511_v1 = vpop.f32.mrf.mxu0 }
  0xe4   : > { %v3513_v62 = vpop.f32.mrf.mxu3 }
  0xe5   : > { %4275 = vst [vmem:[#allocation34_spill] sm:$0xff] %v3513_v62  ;;  %v3523_v58 = vpop.f32.mrf.mxu2  ;;  %v1190_v62 = vrot.slane %v2974_v24, 5 }
  0xe7   : > { %2605 = vmatmul.msk.bf16.gmra.mxu3 %vm745_vm4, %v3507_v19 }
  0xe8   : > { %v3521_v56 = vpop.f32.mrf.mxu1 }
  0xeb   : > { %2556 = vmatmul.msk.bf16.gmra.mxu1 %vm745_vm4, %v3507_v19  ;;  %v3531_v55 = vpop.f32.mrf.mxu0 }
  0xec   : > { %2622 = vmatmul.msk.bf16.gmra.mxu0 %vm745_vm4, %v3272_v8  ;;  %v3536_v31 = vpop.f32.mrf.mxu3 }
  0xed   : > { %4277 = vst [vmem:[#allocation36_spill] sm:$0xff] %v3536_v31  ;;  %v1191_v31 = vsel %vm3307_vm8, %v1189_v6, %v1190_v62  ;;  %v940_v62 = vunpack.c.l.b16 %v3053_v63  ;;  %v1194_v6 = vrot.slane %v3067_v14, 5 }
  0xee   : > { %v1260_v24 = vunpack.c.l.b16 %v1191_v31 }
  0xf0   : > { %v3538_v61 = vpop.f32.mrf.mxu1 }
  0xf1   : > { %2589 = vmatmul.msk.bf16.gmra.mxu2 %vm745_vm4, %v3529_v60  ;;  %v1259_v60 = vunpack.c.l.b16 %v1188_v23 }
  0xf3   : > { %v3565_v41 = vpack.c.b16 %v1260_v24, %v1259_v60  ;;  %v2574_v60 = vrot.slane %v3053_v63, 9  ;;  %v1196_v24 = vrot.slane %v1194_v6, 4 }
  0xf4   : > { %v3546_v42 = vpop.f32.mrf.mxu2 }
  0xf5   : > { %4280 = vst [vmem:[#allocation39_spill] sm:$0xff] %v3565_v41  ;;  %v1195_v14 = vsel %vm3307_vm8, %v2574_v60, %v1194_v6  ;;  %v4284_v60 = vld [vmem:[#allocation15_spill] sm:$0xff] }
  0xf6   : > { %v1261_v63 = vunpack.c.l.b16 %v1195_v14 }
  0xf7   : > { %2606 = vmatmul.msk.bf16.gmra.mxu3 %vm745_vm4, %v3542_v9 }
  0xf8   : > { %v1030_v34 = vpop.f32.mrf.mxu1 }
  0xf9   : > { %v3554_v8 = vpop.f32.mrf.mxu0  ;;  %v1031_v22 = vadd.f32 %v1030_v34, %v3426_v16  ;;  %v3577_v34 = vpack.c.b16 %v941_v46, %v940_v62 }
  0xfa   : > { %v3556_v3 = vpop.f32.mrf.mxu3 }
  0xfb   : > { %4279 = vst [vmem:[#allocation38_spill] sm:$0xff] %v3556_v3  ;;  %2557 = vmatmul.msk.bf16.gmra.mxu1 %vm745_vm4, %v3542_v9 }
  0xfc   : > { %2623 = vmatmul.msk.bf16.gmra.mxu0 %vm745_vm4, %v3032_v36  ;;  %v3563_v38 = vpop.f32.mrf.mxu2  ;;  %v1197_v36 = vrot.slane %v3069_v29, 5 }
 0x100   : > { %v1032_v16 = vpop.f32.mrf.mxu1 }
 0x101   : > { %v3570_v3 = vpop.f32.mrf.mxu0  ;;  %2590 = vmatmul.msk.bf16.gmra.mxu2 %vm745_vm4, %v3565_v41  ;;  %v1033_v23 = vadd.f32 %v1032_v16, %v3447_v15 }
 0x102   : > { %v3572_v31 = vpop.f32.mrf.mxu3 }
 0x103   : > { %4281 = vst [vmem:[#allocation40_spill] sm:$0xff] %v3572_v31  ;;  %v1198_v31 = vsel %vm3307_vm8, %v1196_v24, %v1197_v36  ;;  %v942_v36 = vunpack.c.l.b16 %v3138_v32  ;;  %v943_v24 = vunpack.c.l.b16 %v4284_v60 }
 0x104   : > { %v1351_v9 = vpop.f32.mrf.mxu2  ;;  %v1262_v16 = vunpack.c.l.b16 %v1198_v31 }
 0x105   : > { %v1431_v19 = vadd.f32 %v1351_v9, %v1031_v22 }
 0x106   : > { %v3594_v6 = vpack.c.b16 %v1262_v16, %v1261_v63  ;;  %v4286_v63 = vld [vmem:[#allocation16_spill] sm:$0xff] }
 0x107   : > { %2607 = vmatmul.msk.bf16.gmra.mxu3 %vm745_vm4, %v3577_v34  ;;  %v1204_v16 = vrot.slane %v4286_v63, 5 }
 0x108   : > { %v1035_v15 = vpop.f32.mrf.mxu1  ;;  %4283 = vst [vmem:[#allocation42_spill] sm:$0xff] %v3594_v6 }
 0x109   : > { %v1641_v41 = vpop.f32.mrf.mxu0  ;;  %v1036_v46 = vadd.f32 %v1035_v15, %v3468_v37  ;;  %v1201_v37 = vrot.slane %v4284_v60, 5  ;;  %v3601_v15 = vpack.c.b16 %v943_v24, %v942_v36 }
 0x10a   : > { %v1485_v62 = vpop.f32.mrf.mxu3 }
 0x10b   : > { %v1565_v50 = vadd.f32 %v1485_v62, %v1431_v19  ;;  %2558 = vmatmul.msk.bf16.gmra.mxu1 %vm745_vm4, %v3577_v34  ;;  %4285 = vst [vmem:[#allocation15_spill] sm:$0xff] %v3601_v15  ;;  %v1203_v62 = vrot.slane %v1201_v37, 4 }
 0x10c   : > { %2624 = vmatmul.msk.bf16.gmra.mxu0 %vm745_vm4, %v3118_v49  ;;  %v1353_v29 = vpop.f32.mrf.mxu2 }
 0x10d   : > { %v3592_v9 = vadd.f32 %v1641_v41, %v1565_v50  ;;  %v1432_v22 = vadd.f32 %v1353_v29, %v1033_v23  ;;  %v2575_v23 = vrot.slane %v3138_v32, 9  ;;  %v1205_v36 = vsel %vm3307_vm8, %v1203_v62, %v1204_v16  ;;  %v4291_v62 = vld [vmem:[#allocation22_spill] sm:$0xff] }
 0x10e   : > { %v944_v16 = vunpack.c.l.b16 %v4291_v62 }
 0x10f   : > { %4282 = vst [vmem:[#allocation41_spill] sm:$0xff] %v3592_v9 }
 0x110   : > { %v1037_v19 = vpop.f32.mrf.mxu1 }
 0x111   : > { %v1643_v31 = vpop.f32.mrf.mxu0  ;;  %2591 = vmatmul.msk.bf16.gmra.mxu2 %vm745_vm4, %v3594_v6  ;;  %v1038_v50 = vadd.f32 %v1037_v19, %v3488_v5  ;;  %v1202_v6 = vsel %vm3307_vm8, %v2575_v23, %v1201_v37 }
 0x112   : > { %v1487_v14 = vpop.f32.mrf.mxu3  ;;  %v1263_v19 = vunpack.c.l.b16 %v1202_v6 }
 0x113   : > { %v1566_v41 = vadd.f32 %v1487_v14, %v1432_v22  ;;  %v1264_v14 = vunpack.c.l.b16 %v1205_v36 }
 0x114   : > { %v1356_v29 = vpop.f32.mrf.mxu2 }
 0x115   : > { %v3606_v9 = vadd.f32 %v1643_v31, %v1566_v41  ;;  %v1433_v60 = vadd.f32 %v1356_v29, %v1036_v46  ;;  %v4288_v31 = vld [vmem:[#allocation20_spill] sm:$0xff]  ;;  %v3621_v23 = vpack.c.b16 %v1264_v14, %v1263_v19  ;;  %v4292_v29 = vld [vmem:[#allocation23_spill] sm:$0xff] }
 0x116   : > { %v4294_v14 = vld [vmem:[#allocation24_spill] sm:$0xff] }
 0x117   : > { %4287 = vst [vmem:[#allocation16_spill] sm:$0xff] %v3606_v9  ;;  %2608 = vmatmul.msk.bf16.gmra.mxu3 %vm745_vm4, %v3601_v15  ;;  %v945_v9 = vunpack.c.l.b16 %v4292_v29 }
 0x118   : > { %v1040_v22 = vpop.f32.mrf.mxu1  ;;  %4290 = vst [vmem:[#allocation44_spill] sm:$0xff] %v3621_v23 }
 0x119   : > { %v1646_v5 = vpop.f32.mrf.mxu0  ;;  %v1041_v32 = vadd.f32 %v1040_v22, %v3511_v1  ;;  %v1208_v1 = vrot.slane %v4292_v29, 5  ;;  %v3628_v22 = vpack.c.b16 %v945_v9, %v944_v16 }
 0x11a   : > { %v1490_v24 = vpop.f32.mrf.mxu3 }
 0x11b   : > { %v1567_v63 = vadd.f32 %v1490_v24, %v1433_v60  ;;  %2559 = vmatmul.msk.bf16.gmra.mxu1 %vm745_vm4, %v3601_v15  ;;  %4293 = vst [vmem:[#allocation22_spill] sm:$0xff] %v3628_v22  ;;  %v1210_v19 = vrot.slane %v1208_v1, 4 }
 0x11c   : > { %2625 = vmatmul.msk.bf16.gmra.mxu0 %vm745_vm4, %v4288_v31  ;;  %v1358_v46 = vpop.f32.mrf.mxu2 }
 0x11d   : > { %v3619_v41 = vadd.f32 %v1646_v5, %v1567_v63  ;;  %v1434_v37 = vadd.f32 %v1358_v46, %v1038_v50  ;;  %v2576_v50 = vrot.slane %v4291_v62, 9  ;;  %v1211_v63 = vrot.slane %v4294_v14, 5 }
 0x11f   : > { %4289 = vst [vmem:[#allocation43_spill] sm:$0xff] %v3619_v41  ;;  %v1212_v9 = vsel %vm3307_vm8, %v1210_v19, %v1211_v63  ;;  %v4299_v63 = vld [vmem:[#allocation6_spill] sm:$0xff] }
 0x120   : > { %v1042_v60 = vpop.f32.mrf.mxu1 }
 0x121   : > { %v1648_v6 = vpop.f32.mrf.mxu0  ;;  %2592 = vmatmul.msk.bf16.gmra.mxu2 %vm745_vm4, %v3621_v23  ;;  %v1043_v5 = vadd.f32 %v1042_v60, %v3531_v55  ;;  %v1209_v23 = vsel %vm3307_vm8, %v2576_v50, %v1208_v1  ;;  %v4298_v50 = vld [vmem:[#allocation5_spill] sm:$0xff] }
 0x122   : > { %v1492_v36 = vpop.f32.mrf.mxu3  ;;  %v1265_v60 = vunpack.c.l.b16 %v1209_v23  ;;  %v946_v19 = vunpack.c.l.b16 %v4298_v50 }
 0x123   : > { %v1568_v24 = vadd.f32 %v1492_v36, %v1434_v37  ;;  %v1266_v36 = vunpack.c.l.b16 %v1212_v9 }
 0x124   : > { %v1361_v46 = vpop.f32.mrf.mxu2 }
 0x125   : > { %v3633_v41 = vadd.f32 %v1648_v6, %v1568_v24  ;;  %v1435_v29 = vadd.f32 %v1361_v46, %v1041_v32  ;;  %v3648_v24 = vpack.c.b16 %v1266_v36, %v1265_v60  ;;  %v947_v46 = vunpack.c.l.b16 %v4299_v63  ;;  %v4301_v36 = vld [vmem:[#allocation7_spill] sm:$0xff] }
 0x127   : > { %4295 = vst [vmem:[#allocation23_spill] sm:$0xff] %v3633_v41  ;;  %2609 = vmatmul.msk.bf16.gmra.mxu3 %vm745_vm4, %v3628_v22 }
 0x128   : > { %v1045_v37 = vpop.f32.mrf.mxu1  ;;  %4297 = vst [vmem:[#allocation45_spill] sm:$0xff] %v3648_v24 }
 0x129   : > { %v1651_v55 = vpop.f32.mrf.mxu0  ;;  %v1046_v62 = vadd.f32 %v1045_v37, %v3554_v8  ;;  %v1215_v8 = vrot.slane %v4299_v63, 5  ;;  %v3655_v37 = vpack.c.b16 %v947_v46, %v946_v19 }
 0x12a   : > { %v1495_v16 = vpop.f32.mrf.mxu3 }
 0x12b   : > { %v1569_v14 = vadd.f32 %v1495_v16, %v1435_v29  ;;  %2560 = vmatmul.msk.bf16.gmra.mxu1 %vm745_vm4, %v3628_v22  ;;  %4300 = vst [vmem:[#allocation5_spill] sm:$0xff] %v3655_v37  ;;  %v1217_v60 = vrot.slane %v1215_v8, 4 }
 0x12c   : > { %2626 = vmatmul.msk.bf16.gmra.mxu0 %vm745_vm4, %v3292_v52  ;;  %v1363_v32 = vpop.f32.mrf.mxu2 }
 0x12d   : > { %v3646_v6 = vadd.f32 %v1651_v55, %v1569_v14  ;;  %v1436_v1 = vadd.f32 %v1363_v32, %v1043_v5  ;;  %v2577_v5 = vrot.slane %v4298_v50, 9  ;;  %v1218_v14 = vrot.slane %v4301_v36, 5  ;;  %v4303_v36 = vld [vmem:[#allocation9_spill] sm:$0xff] }
 0x12f   : > { %4296 = vst [vmem:[#allocation24_spill] sm:$0xff] %v3646_v6  ;;  %v1216_v41 = vsel %vm3307_vm8, %v2577_v5, %v1215_v8  ;;  %v1219_v19 = vsel %vm3307_vm8, %v1217_v60, %v1218_v14  ;;  %v4306_v5 = vld [vmem:[#allocation10_spill] sm:$0xff]  ;;  %v4307_v14 = vld [vmem:[#allocation11_spill] sm:$0xff] }
 0x130   : > { %v1047_v29 = vpop.f32.mrf.mxu1  ;;  %v1267_v50 = vunpack.c.l.b16 %v1216_v41  ;;  %v948_v60 = vunpack.c.l.b16 %v4306_v5  ;;  %v1222_v41 = vrot.slane %v4307_v14, 5 }
 0x131   : > { %v1653_v23 = vpop.f32.mrf.mxu0  ;;  %2593 = vmatmul.msk.bf16.gmra.mxu2 %vm745_vm4, %v3648_v24  ;;  %v1048_v55 = vadd.f32 %v1047_v29, %v3570_v3  ;;  %v1268_v29 = vunpack.c.l.b16 %v1219_v19 }
 0x132   : > { %v1497_v9 = vpop.f32.mrf.mxu3 }
 0x133   : > { %v1570_v16 = vadd.f32 %v1497_v9, %v1436_v1  ;;  %v3674_v8 = vpack.c.b16 %v1268_v29, %v1267_v50  ;;  %v4309_v50 = vld [vmem:[#allocation12_spill] sm:$0xff] }
 0x134   : > { %v1366_v32 = vpop.f32.mrf.mxu2  ;;  %v1225_v29 = vrot.slane %v4309_v50, 5 }
 0x135   : > { %v3660_v6 = vadd.f32 %v1653_v23, %v1570_v16  ;;  %v1437_v63 = vadd.f32 %v1366_v32, %v1046_v62  ;;  %4305 = vst [vmem:[#allocation46_spill] sm:$0xff] %v3674_v8  ;;  %v949_v32 = vunpack.c.l.b16 %v4307_v14 }
 0x137   : > { %4302 = vst [vmem:[#allocation6_spill] sm:$0xff] %v3660_v6  ;;  %2610 = vmatmul.msk.bf16.gmra.mxu3 %vm745_vm4, %v3655_v37  ;;  %v3681_v6 = vpack.c.b16 %v949_v32, %v948_v60 }
 0x138   : > { %v1050_v1 = vpop.f32.mrf.mxu1 }
 0x139   : > { %v1656_v3 = vpop.f32.mrf.mxu0  ;;  %4308 = vst [vmem:[#allocation10_spill] sm:$0xff] %v3681_v6 }
 0x13a   : > { %v1500_v46 = vpop.f32.mrf.mxu3 }
 0x13b   : > { %v1571_v9 = vadd.f32 %v1500_v46, %v1437_v63  ;;  %2561 = vmatmul.msk.bf16.gmra.mxu1 %vm745_vm4, %v3655_v37 }
 0x13c   : > { %2627 = vmatmul.msk.bf16.gmra.mxu0 %vm745_vm4, %v4303_v36  ;;  %v1368_v62 = vpop.f32.mrf.mxu2 }
 0x13d   : > { %v3672_v23 = vadd.f32 %v1656_v3, %v1571_v9  ;;  %v1438_v16 = vadd.f32 %v1368_v62, %v1048_v55  ;;  %v2578_v3 = vrot.slane %v4306_v5, 9  ;;  %v1224_v55 = vrot.slane %v1222_v41, 4 }
 0x13e   : > { %v1051_v9 = vadd.f32 %v1050_v1, %v3399_v30  ;;  %v4311_v30 = vld [vmem:[#allocation14_spill] sm:$0xff] }
 0x13f   : > { %4304 = vst [vmem:[#allocation7_spill] sm:$0xff] %v3672_v23 }
 0x140   : > { %v1052_v63 = vpop.f32.mrf.mxu1 }
 0x141   : > { %v1658_v19 = vpop.f32.mrf.mxu0  ;;  %2594 = vmatmul.msk.bf16.gmra.mxu2 %vm745_vm4, %v3674_v8  ;;  %v1223_v8 = vsel %vm3307_vm8, %v2578_v3, %v1222_v41  ;;  %v1053_v1 = vadd.f32 %v1052_v63, %v3418_v17 }
 0x142   : > { %v1502_v46 = vpop.f32.mrf.mxu3 }
 0x143   : > { %v1572_v36 = vadd.f32 %v1502_v46, %v1438_v16  ;;  %v1226_v16 = vsel %vm3307_vm8, %v1224_v55, %v1225_v29  ;;  %v1269_v46 = vunpack.c.l.b16 %v1223_v8  ;;  %v4314_v55 = vld [vmem:[#allocation17_spill] sm:$0xff] }
 0x144   : > { %v1371_v62 = vpop.f32.mrf.mxu2  ;;  %v1270_v50 = vunpack.c.l.b16 %v1226_v16  ;;  %v950_v29 = vunpack.c.l.b16 %v4314_v55  ;;  %v2579_v63 = vrot.slane %v4314_v55, 9 }
 0x145   : > { %v3686_v23 = vadd.f32 %v1658_v19, %v1572_v36  ;;  %v1439_v14 = vadd.f32 %v1371_v62, %v1051_v9  ;;  %v4315_v9 = vld [vmem:[#allocation18_spill] sm:$0xff] }
 0x146   : > { %v3701_v3 = vpack.c.b16 %v1270_v50, %v1269_v46  ;;  %v951_v8 = vunpack.c.l.b16 %v4315_v9  ;;  %v1229_v62 = vrot.slane %v4315_v9, 5  ;;  %v4317_v46 = vld [vmem:[#allocation19_spill] sm:$0xff] }
 0x147   : > { %4310 = vst [vmem:[#allocation11_spill] sm:$0xff] %v3686_v23  ;;  %2611 = vmatmul.msk.bf16.gmra.mxu3 %vm745_vm4, %v3681_v6  ;;  %v1232_v50 = vrot.slane %v4317_v46, 5 }
 0x148   : > { %v1055_v5 = vpop.f32.mrf.mxu1  ;;  %4313 = vst [vmem:[#allocation47_spill] sm:$0xff] %v3701_v3  ;;  %v3708_v17 = vpack.c.b16 %v951_v8, %v950_v29  ;;  %v1230_v29 = vsel %vm3307_vm8, %v2579_v63, %v1229_v62 }
 0x149   : > { %v1661_v60 = vpop.f32.mrf.mxu0  ;;  %v1271_v46 = vunpack.c.l.b16 %v1230_v29  ;;  %v4323_v29 = vld [vmem:[#allocation26_spill] sm:$0xff] }
 0x14a   : > { %v1505_v32 = vpop.f32.mrf.mxu3  ;;  %4316 = vst [vmem:[#allocation17_spill] sm:$0xff] %v3708_v17 }
 0x14b   : > { %v1573_v37 = vadd.f32 %v1505_v32, %v1439_v14  ;;  %2562 = vmatmul.msk.bf16.gmra.mxu1 %vm745_vm4, %v3681_v6 }
 0x14c   : > { %2628 = vmatmul.msk.bf16.gmra.mxu0 %vm745_vm4, %v4311_v30  ;;  %v1373_v36 = vpop.f32.mrf.mxu2 }
 0x14d   : > { %v3699_v19 = vadd.f32 %v1661_v60, %v1573_v37  ;;  %v1440_v41 = vadd.f32 %v1373_v36, %v1053_v1  ;;  %v1231_v60 = vrot.slane %v1229_v62, 4  ;;  %v1056_v1 = vadd.f32 %v1055_v5, %v3435_v26  ;;  %v248_v26 = vld [vmem:[%s2953_s19 + $0x188] sm:$0xff] }
 0x14f   : > { %4312 = vst [vmem:[#allocation12_spill] sm:$0xff] %v3699_v19 }
 0x150   : > { %v1057_v16 = vpop.f32.mrf.mxu1 }
 0x151   : > { %v1663_v14 = vpop.f32.mrf.mxu0  ;;  %2595 = vmatmul.msk.bf16.gmra.mxu2 %vm745_vm4, %v3701_v3 }
 0x152   : > { %v1507_v32 = vpop.f32.mrf.mxu3 }
 0x153   : > { %v1574_v37 = vadd.f32 %v1507_v32, %v1440_v41  ;;  %v1233_v41 = vsel %vm3307_vm8, %v1231_v60, %v1232_v50  ;;  %v247_v32 = vld [vmem:[%s2953_s19 + $0x180] sm:$0xff]  ;;  %v3730_v60 = vpack.c.bf16 %v248_v26, %v248_v26 }
 0x154   : > { %v1376_v36 = vpop.f32.mrf.mxu2  ;;  %v1272_v3 = vunpack.c.l.b16 %v1233_v41  ;;  %v3728_v62 = vpack.c.bf16 %v247_v32, %v247_v32  ;;  %v953_v41 = vunpack.c.l.b16 %v4323_v29  ;;  %v249_v32 = vld [vmem:[%s2953_s19 + $0x190] sm:$0x3] }
 0x155   : > { %v3713_v9 = vadd.f32 %v1663_v14, %v1574_v37  ;;  %v1441_v19 = vadd.f32 %v1376_v36, %v1056_v1  ;;  %v4319_v14 = vld [vmem:[#allocation21_spill] sm:$0xff]  ;;  %v1058_v37 = vadd.f32 %v1057_v16, %v3455_v39  ;;  %v1607_v26 = vshll.u32 %v3730_v60, 16 }
 0x156   : > { %v3734_v36 = vpack.c.b16 %v1272_v3, %v1271_v46  ;;  %v1598_v39 = vshrl.u32 %v3728_v62, 16  ;;  %v3751_v6 = vpack.c.bf16 %v249_v32, %v249_v32 }
 0x157   : > { %4318 = vst [vmem:[#allocation18_spill] sm:$0xff] %v3713_v9  ;;  %2612 = vmatmul.msk.bf16.gmra.mxu3 %vm745_vm4, %v3708_v17  ;;  %v1236_v9 = vrot.slane %v4323_v29, 5  ;;  %v4324_v29 = vld [vmem:[#allocation27_spill] sm:$0xff]  ;;  %v1609_v31 = vrot.slane %v1607_v26, 5 }
 0x158   : > { %v1060_v8 = vpop.f32.mrf.mxu1  ;;  %4321 = vst [vmem:[#allocation48_spill] sm:$0xff] %v3734_v36  ;;  %v1600_v24 = vrot.slane %v1598_v39, 4 }
 0x159   : > { %v1666_v55 = vpop.f32.mrf.mxu0  ;;  %v1061_v30 = vadd.f32 %v1060_v8, %v3478_v2 }
 0x15a   : > { %v1510_v23 = vpop.f32.mrf.mxu3 }
 0x15b   : > { %v1575_v5 = vadd.f32 %v1510_v23, %v1441_v19  ;;  %2563 = vmatmul.msk.bf16.gmra.mxu1 %vm745_vm4, %v3708_v17  ;;  %v4322_v23 = vld [vmem:[#allocation25_spill] sm:$0xff]  ;;  %v1601_v17 = vshll.u32 %v3728_v62, 16 }
 0x15c   : > { %2629 = vmatmul.msk.bf16.gmra.mxu0 %vm745_vm4, %v4319_v14  ;;  %v1378_v63 = vpop.f32.mrf.mxu2  ;;  %v952_v19 = vunpack.c.l.b16 %v4322_v23 }
 0x15d   : > { %v3732_v50 = vadd.f32 %v1666_v55, %v1575_v5  ;;  %v1442_v1 = vadd.f32 %v1378_v63, %v1058_v37  ;;  %v1611_v55 = vshrl.u32 %v3730_v60, 16  ;;  %v2580_v37 = vrot.slane %v4322_v23, 9 }
 0x15e   : > { %v3746_v3 = vpack.c.b16 %v953_v41, %v952_v19  ;;  %v1238_v63 = vrot.slane %v1236_v9, 4  ;;  %v1603_v22 = vrot.slane %v1601_v17, 5  ;;  %v1617_v17 = vshll.u32 %v3751_v6, 16 }
 0x15f   : > { %4320 = vst [vmem:[#allocation19_spill] sm:$0xff] %v3732_v50  ;;  %v1239_v50 = vrot.slane %v4324_v29, 5  ;;  %v1613_v15 = vrot.slane %v1611_v55, 4 }
 0x160   : > { %v1062_v14 = vpop.f32.mrf.mxu1  ;;  %v1604_v19 = vor.u32 %v1603_v22, %v1600_v24  ;;  %v1619_v55 = vrot.slane %v1617_v17, 5 }
 0x161   : > { %v1668_v16 = vpop.f32.mrf.mxu0  ;;  %2596 = vmatmul.msk.bf16.gmra.mxu2 %vm745_vm4, %v3734_v36  ;;  %v1240_v23 = vsel %vm3307_vm8, %v1238_v63, %v1239_v50  ;;  %v1614_v41 = vor.u32 %v1613_v15, %v1609_v31 }
 0x162   : > { %v1512_v5 = vpop.f32.mrf.mxu3 }
 0x163   : > { %v1576_v46 = vadd.f32 %v1512_v5, %v1442_v1  ;;  %v1237_v1 = vsel %vm3307_vm8, %v2580_v37, %v1236_v9  ;;  %v1605_v9 = vrot.slane %v1604_v19, 4  ;;  %v1615_v50 = vrot.slane %v1614_v41, 4 }
 0x164   : > { %v1381_v52 = vpop.f32.mrf.mxu2  ;;  %v1273_v32 = vunpack.c.l.b16 %v1237_v1  ;;  %v1467_v5 = vunpack.c.l.b16 %v3728_v62 }
 0x165   : > { %v3753_v49 = vadd.f32 %v1668_v16, %v1576_v46  ;;  %v1443_v36 = vadd.f32 %v1381_v52, %v1061_v30  ;;  %v1274_v16 = vunpack.c.l.b16 %v1240_v23  ;;  %v1063_v52 = vadd.f32 %v1062_v14, %v3500_v47 }
 0x166   : > { %v1610_v47 = vsel %vm2991_vm5, %v1605_v9, %v1609_v31  ;;  %v1620_v14 = vsel %vm2991_vm5, %v1615_v50, %v1619_v55 }
 0x167   : > { %2613 = vmatmul.msk.bf16.gmra.mxu3 %vm745_vm4, %v3746_v3  ;;  %v3769_v24 = vpack.c.b16 %v1274_v16, %v1273_v32  ;;  %v1624_v19 = vunpack.c.l.b16 %v1620_v14 }
 0x168   : > { %v1065_v8 = vpop.f32.mrf.mxu1 }
 0x169   : > { %v1671_v2 = vpop.f32.mrf.mxu0  ;;  %v1066_v23 = vadd.f32 %v1065_v8, %v3521_v56 }
 0x16a   : > { %v1515_v39 = vpop.f32.mrf.mxu3 }
 0x16b   : > { %v1577_v26 = vadd.f32 %v1515_v39, %v1443_v36  ;;  %2564 = vmatmul.msk.bf16.gmra.mxu1 %vm745_vm4, %v3746_v3  ;;  %v1468_v36 = vunpack.c.l.b16 %v3730_v60 }
 0x16c   : > { %2630 = vmatmul.msk.bf16.gmra.mxu0 %vm745_vm4, %v3305_v53  ;;  %v1383_v30 = vpop.f32.mrf.mxu2 }
 0x16d   : > { %v3767_v22 = vadd.f32 %v1671_v2, %v1577_v26  ;;  %v1444_v15 = vadd.f32 %v1383_v30, %v1063_v52  ;;  %v3779_v1 = vpack.c.b16 %v1468_v36, %v1467_v5  ;;  %v1623_v2 = vunpack.c.l.b16 %v1610_v47 }
 0x16f   : > { %v3786_v31 = vpack.c.b16 %v1624_v19, %v1623_v2 }
 0x170   : > { %v1067_v37 = vpop.f32.mrf.mxu1 }
 0x171   : > { %v1673_v46 = vpop.f32.mrf.mxu0  ;;  %2597 = vmatmul.msk.bf16.gmra.mxu2 %vm745_vm4, %v3769_v24  ;;  %v1068_v56 = vadd.f32 %v1067_v37, %v3538_v61 }
 0x172   : > { %v1517_v63 = vpop.f32.mrf.mxu3 }
 0x173   : > { %v1578_v29 = vadd.f32 %v1517_v63, %v1444_v15 }
 0x174   : > { %v1386_v41 = vpop.f32.mrf.mxu2 }
 0x175   : > { %v3782_v17 = vadd.f32 %v1673_v46, %v1578_v29  ;;  %v1445_v39 = vadd.f32 %v1386_v41, %v1066_v23 }
 0x177   : > { %2614 = vmatmul.msk.bf16.gmra.mxu3 %vm745_vm4, %v3779_v1 }
 0x178   : > { %v1070_v16 = vpop.f32.mrf.mxu1 }
 0x179   : > { %v1676_v32 = vpop.f32.mrf.mxu0  ;;  %v1071_v36 = vadd.f32 %v1070_v16, %v3420_v44 }
 0x17a   : > { %v1520_v26 = vpop.f32.mrf.mxu3 }
 0x17b   : > { %v1579_v52 = vadd.f32 %v1520_v26, %v1445_v39  ;;  %2634 = vmatmul.msk.bf16.vlgmr.msra.gmra.mxu1 %vm745_vm4, %v3359_v43 }
 0x17c   : > { %2631 = vmatmul.msk.bf16.gmra.mxu0 %vm745_vm4, %v3786_v31  ;;  %v1388_v8 = vpop.f32.mrf.mxu2 }
 0x17d   : > { %v3793_v30 = vadd.f32 %v1676_v32, %v1579_v52  ;;  %v1446_v9 = vadd.f32 %v1388_v8, %v1068_v56 }
 0x180   : > { %v1072_v55 = vpop.f32.mrf.mxu1 }
 0x181   : > { %v1678_v50 = vpop.f32.mrf.mxu0  ;;  %2651 = vmatmul.msk.bf16.vlgmr.msra.gmra.mxu2 %vm745_vm4, %v3372_v11  ;;  %v1073_v29 = vadd.f32 %v1072_v55, %v3441_v27 }
 0x182   : > { %v1522_v15 = vpop.f32.mrf.mxu3 }
 0x183   : > { %v1580_v5 = vadd.f32 %v1522_v15, %v1446_v9 }
 0x184   : > { %v1391_v46 = vpop.f32.mrf.mxu2 }
 0x185   : > { %v3798_v47 = vadd.f32 %v1678_v50, %v1580_v5  ;;  %v1447_v61 = vadd.f32 %v1391_v46, %v1071_v36 }
 0x187   : > { %2668 = vmatmul.msk.bf16.vlgmr.msra.gmra.mxu3 %vm745_vm4, %v3250_v45 }
 0x188   : > { %v1075_v14 = vpop.f32.mrf.mxu1 }
 0x189   : > { %v1681_v43 = vpop.f32.mrf.mxu0  ;;  %v1076_v39 = vadd.f32 %v1075_v14, %v3461_v54 }
 0x18a   : > { %v1525_v37 = vpop.f32.mrf.mxu3 }
 0x18b   : > { %v1581_v63 = vadd.f32 %v1525_v37, %v1447_v61  ;;  %2635 = vmatmul.msk.bf16.gmra.mxu1 %vm745_vm4, %v3362_v10 }
 0x18c   : > { %2686 = vmatmul.msk.bf16.vlgmr.msra.gmra.mxu0 %vm745_vm4, %v3362_v10  ;;  %v1393_v11 = vpop.f32.mrf.mxu2 }
 0x18d   : > { %v3807_v44 = vadd.f32 %v1681_v43, %v1581_v63  ;;  %v1448_v23 = vadd.f32 %v1393_v11, %v1073_v29 }
 0x190   : > { %v1077_v19 = vpop.f32.mrf.mxu1 }
 0x191   : > { %v1683_v2 = vpop.f32.mrf.mxu0  ;;  %2652 = vmatmul.msk.bf16.gmra.mxu2 %vm745_vm4, %v3385_v57  ;;  %v1078_v8 = vadd.f32 %v1077_v19, %v3482_v20 }
 0x192   : > { %v1527_v41 = vpop.f32.mrf.mxu3 }
 0x193   : > { %v1582_v45 = vadd.f32 %v1527_v41, %v1448_v23 }
 0x194   : > { %v1396_v32 = vpop.f32.mrf.mxu2 }
 0x195   : > { %v3812_v16 = vadd.f32 %v1683_v2, %v1582_v45  ;;  %v1449_v27 = vadd.f32 %v1396_v32, %v1076_v39 }
 0x197   : > { %2669 = vmatmul.msk.bf16.gmra.mxu3 %vm745_vm4, %v3339_v40 }
 0x198   : > { %v1080_v26 = vpop.f32.mrf.mxu1 }
 0x199   : > { %v1686_v10 = vpop.f32.mrf.mxu0  ;;  %v1081_v5 = vadd.f32 %v1080_v26, %v3503_v33 }
 0x19a   : > { %v1530_v52 = vpop.f32.mrf.mxu3 }
 0x19b   : > { %v1583_v56 = vadd.f32 %v1530_v52, %v1449_v27  ;;  %2636 = vmatmul.msk.bf16.gmra.mxu1 %vm745_vm4, %v3401_v0 }
 0x19c   : > { %2687 = vmatmul.msk.bf16.gmra.mxu0 %vm745_vm4, %v3401_v0  ;;  %v1398_v57 = vpop.f32.mrf.mxu2 }
 0x19d   : > { %v3821_v54 = vadd.f32 %v1686_v10, %v1583_v56  ;;  %v1450_v9 = vadd.f32 %v1398_v57, %v1078_v8 }
 0x1a0   : > { %v1082_v55 = vpop.f32.mrf.mxu1 }
 0x1a1   : > { %v1688_v50 = vpop.f32.mrf.mxu0  ;;  %2653 = vmatmul.msk.bf16.gmra.mxu2 %vm745_vm4, %v3408_v25  ;;  %v1083_v37 = vadd.f32 %v1082_v55, %v3523_v58 }
 0x1a2   : > { %v1532_v15 = vpop.f32.mrf.mxu3 }
 0x1a3   : > { %v1584_v40 = vadd.f32 %v1532_v15, %v1450_v9 }
 0x1a4   : > { %v1401_v36 = vpop.f32.mrf.mxu2 }
 0x1a5   : > { %v3826_v46 = vadd.f32 %v1688_v50, %v1584_v40  ;;  %v1451_v20 = vadd.f32 %v1401_v36, %v1081_v5  ;;  %v4325_v40 = vld [vmem:[#allocation30_spill] sm:$0xff] }
 0x1a7   : > { %2670 = vmatmul.msk.bf16.gmra.mxu3 %vm745_vm4, %v3014_v13 }
 0x1a8   : > { %v1085_v61 = vpop.f32.mrf.mxu1 }
 0x1a9   : > { %v1691_v0 = vpop.f32.mrf.mxu0  ;;  %v1086_v2 = vadd.f32 %v1085_v61, %v3546_v42 }
 0x1aa   : > { %v1535_v43 = vpop.f32.mrf.mxu3 }
 0x1ab   : > { %v1585_v14 = vadd.f32 %v1535_v43, %v1451_v20  ;;  %2637 = vmatmul.msk.bf16.gmra.mxu1 %vm745_vm4, %v3428_v18 }
 0x1ac   : > { %2688 = vmatmul.msk.bf16.gmra.mxu0 %vm745_vm4, %v3428_v18  ;;  %v1403_v25 = vpop.f32.mrf.mxu2 }
 0x1ad   : > { %v3835_v33 = vadd.f32 %v1691_v0, %v1585_v14  ;;  %v1452_v63 = vadd.f32 %v1403_v25, %v1083_v37  ;;  %v4327_v14 = vld [vmem:[#allocation31_spill] sm:$0xff] }
 0x1b0   : > { %v1087_v11 = vpop.f32.mrf.mxu1 }
 0x1b1   : > { %v1693_v29 = vpop.f32.mrf.mxu0  ;;  %2654 = vmatmul.msk.bf16.gmra.mxu2 %vm745_vm4, %v3439_v28  ;;  %v1088_v27 = vadd.f32 %v1087_v11, %v3563_v38  ;;  %v4328_v11 = vld [vmem:[#allocation28_spill] sm:$0xff] }
 0x1b2   : > { %v1537_v23 = vpop.f32.mrf.mxu3 }
 0x1b3   : > { %v1586_v13 = vadd.f32 %v1537_v23, %v1452_v63 }
 0x1b4   : > { %v1406_v19 = vpop.f32.mrf.mxu2 }
 0x1b5   : > { %v3840_v41 = vadd.f32 %v1693_v29, %v1586_v13  ;;  %v1453_v58 = vadd.f32 %v1406_v19, %v1086_v2  ;;  %v4329_v19 = vld [vmem:[#allocation35_spill] sm:$0xff] }
 0x1b7   : > { %2671 = vmatmul.msk.bf16.gmra.mxu3 %vm745_vm4, %v3097_v12 }
 0x1b8   : > { %v1090_v45 = vpop.f32.mrf.mxu1 }
 0x1b9   : > { %v1696_v18 = vpop.f32.mrf.mxu0  ;;  %v1091_v8 = vadd.f32 %v1090_v45, %v3430_v35 }
 0x1ba   : > { %v1540_v39 = vpop.f32.mrf.mxu3 }
 0x1bb   : > { %v1587_v32 = vadd.f32 %v1540_v39, %v1453_v58  ;;  %2638 = vmatmul.msk.bf16.gmra.mxu1 %vm745_vm4, %v3463_v59  ;;  %v4330_v58 = vld [vmem:[#allocation32_spill] sm:$0xff] }
 0x1bc   : > { %2689 = vmatmul.msk.bf16.gmra.mxu0 %vm745_vm4, %v3463_v59  ;;  %v1408_v28 = vpop.f32.mrf.mxu2 }
 0x1bd   : > { %v3849_v42 = vadd.f32 %v1696_v18, %v1587_v32  ;;  %v1454_v10 = vadd.f32 %v1408_v28, %v1088_v27 }
 0x1c0   : > { %v1092_v52 = vpop.f32.mrf.mxu1 }
 0x1c1   : > { %v1698_v26 = vpop.f32.mrf.mxu0  ;;  %2655 = vmatmul.msk.bf16.gmra.mxu2 %vm745_vm4, %v3474_v51  ;;  %v1093_v5 = vadd.f32 %v1092_v52, %v4325_v40 }
 0x1c2   : > { %v1542_v56 = vpop.f32.mrf.mxu3 }
 0x1c3   : > { %v1588_v12 = vadd.f32 %v1542_v56, %v1454_v10  ;;  %v4332_v56 = vld [vmem:[#allocation34_spill] sm:$0xff] }
 0x1c4   : > { %v1411_v57 = vpop.f32.mrf.mxu2 }
 0x1c5   : > { %v3854_v9 = vadd.f32 %v1698_v26, %v1588_v12  ;;  %v1455_v38 = vadd.f32 %v1411_v57, %v1091_v8  ;;  %v4331_v26 = vld [vmem:[#allocation37_spill] sm:$0xff] }
 0x1c7   : > { %2672 = vmatmul.msk.bf16.gmra.mxu3 %vm745_vm4, %v3184_v4  ;;  %v4326_v4 = vld [vmem:[#allocation33_spill] sm:$0xff] }
 0x1c8   : > { %v1095_v50 = vpop.f32.mrf.mxu1 }
 0x1c9   : > { %v1701_v59 = vpop.f32.mrf.mxu0  ;;  %v1096_v37 = vadd.f32 %v1095_v50, %v4327_v14 }
 0x1ca   : > { %v1545_v55 = vpop.f32.mrf.mxu3 }
 0x1cb   : > { %v1589_v15 = vadd.f32 %v1545_v55, %v1455_v38  ;;  %2639 = vmatmul.msk.bf16.gmra.mxu1 %vm745_vm4, %v3496_v21 }
 0x1cc   : > { %2690 = vmatmul.msk.bf16.gmra.mxu0 %vm745_vm4, %v3496_v21  ;;  %v1413_v35 = vpop.f32.mrf.mxu2 }
 0x1cd   : > { %v3863_v51 = vadd.f32 %v1701_v59, %v1589_v15  ;;  %v1456_v36 = vadd.f32 %v1413_v35, %v1093_v5  ;;  %v4333_v59 = vld [vmem:[#allocation8_spill] sm:$0xff]  ;;  %v4334_v5 = vld [vmem:[#allocation39_spill] sm:$0xff] }
 0x1ce   : > { %v4335_v35 = vld [vmem:[#allocation36_spill] sm:$0xff] }
 0x1d0   : > { %v1097_v0 = vpop.f32.mrf.mxu1 }
 0x1d1   : > { %v1703_v20 = vpop.f32.mrf.mxu0  ;;  %2656 = vmatmul.msk.bf16.gmra.mxu2 %vm745_vm4, %v4326_v4  ;;  %v1098_v18 = vadd.f32 %v1097_v0, %v4330_v58 }
 0x1d2   : > { %v1547_v61 = vpop.f32.mrf.mxu3 }
 0x1d3   : > { %v1590_v43 = vadd.f32 %v1547_v61, %v1456_v36 }
 0x1d4   : > { %v1416_v25 = vpop.f32.mrf.mxu2 }
 0x1d5   : > { %v3868_v63 = vadd.f32 %v1703_v20, %v1590_v43  ;;  %v1457_v29 = vadd.f32 %v1416_v25, %v1096_v37  ;;  %v4336_v25 = vld [vmem:[#allocation38_spill] sm:$0xff] }
 0x1d7   : > { %2673 = vmatmul.msk.bf16.gmra.mxu3 %vm745_vm4, %v4328_v11 }
 0x1d8   : > { %v1100_v23 = vpop.f32.mrf.mxu1 }
 0x1d9   : > { %v1706_v21 = vpop.f32.mrf.mxu0  ;;  %v1101_v12 = vadd.f32 %v1100_v23, %v4332_v56 }
 0x1da   : > { %v1550_v13 = vpop.f32.mrf.mxu3 }
 0x1db   : > { %v1591_v2 = vadd.f32 %v1550_v13, %v1457_v29  ;;  %2640 = vmatmul.msk.bf16.gmra.mxu1 %vm745_vm4, %v4329_v19  ;;  %v4337_v13 = vld [vmem:[#allocation13_spill] sm:$0xff] }
 0x1dc   : > { %2691 = vmatmul.msk.bf16.gmra.mxu0 %vm745_vm4, %v4329_v19  ;;  %v1418_v45 = vpop.f32.mrf.mxu2 }
 0x1dd   : > { %v3877_v39 = vadd.f32 %v1706_v21, %v1591_v2  ;;  %v1458_v32 = vadd.f32 %v1418_v45, %v1098_v18  ;;  %v4338_v45 = vld [vmem:[#allocation42_spill] sm:$0xff] }
 0x1e0   : > { %v1102_v28 = vpop.f32.mrf.mxu1 }
 0x1e1   : > { %v1708_v27 = vpop.f32.mrf.mxu0  ;;  %2657 = vmatmul.msk.bf16.gmra.mxu2 %vm745_vm4, %v4331_v26  ;;  %v1103_v36 = vadd.f32 %v1102_v28, %v4335_v35 }
 0x1e2   : > { %v1552_v10 = vpop.f32.mrf.mxu3 }
 0x1e3   : > { %v1592_v52 = vadd.f32 %v1552_v10, %v1458_v32  ;;  %v4339_v32 = vld [vmem:[#allocation40_spill] sm:$0xff] }
 0x1e4   : > { %v1421_v8 = vpop.f32.mrf.mxu2 }
 0x1e5   : > { %v3882_v57 = vadd.f32 %v1708_v27, %v1592_v52  ;;  %v1459_v38 = vadd.f32 %v1421_v8, %v1101_v12  ;;  %v4340_v12 = vld [vmem:[#allocation15_spill] sm:$0xff] }
 0x1e7   : > { %2674 = vmatmul.msk.bf16.gmra.mxu3 %vm745_vm4, %v4333_v59 }
 0x1e8   : > { %v1105_v55 = vpop.f32.mrf.mxu1 }
 0x1e9   : > { %v1711_v50 = vpop.f32.mrf.mxu0  ;;  %v1106_v29 = vadd.f32 %v1105_v55, %v4336_v25 }
 0x1ea   : > { %v1555_v15 = vpop.f32.mrf.mxu3 }
 0x1eb   : > { %v1593_v40 = vadd.f32 %v1555_v15, %v1459_v38  ;;  %2641 = vmatmul.msk.bf16.gmra.mxu1 %vm745_vm4, %v4334_v5  ;;  %v4341_v38 = vld [vmem:[#allocation41_spill] sm:$0xff]  ;;  %v4342_v15 = vld [vmem:[#allocation20_spill] sm:$0xff] }
 0x1ec   : > { %2692 = vmatmul.msk.bf16.gmra.mxu0 %vm745_vm4, %v4334_v5  ;;  %v1423_v20 = vpop.f32.mrf.mxu2 }
 0x1ed   : > { %v3891_v0 = vadd.f32 %v1711_v50, %v1593_v40  ;;  %v1460_v61 = vadd.f32 %v1423_v20, %v1103_v36 }
 0x1f0   : > { %v1107_v43 = vpop.f32.mrf.mxu1 }
 0x1f1   : > { %v1713_v4 = vpop.f32.mrf.mxu0  ;;  %2658 = vmatmul.msk.bf16.gmra.mxu2 %vm745_vm4, %v3577_v34  ;;  %v1108_v27 = vadd.f32 %v1107_v43, %v4339_v32  ;;  %v4346_v32 = vld [vmem:[#allocation43_spill] sm:$0xff] }
 0x1f2   : > { %v1557_v14 = vpop.f32.mrf.mxu3 }
 0x1f3   : > { %v1594_v37 = vadd.f32 %v1557_v14, %v1460_v61  ;;  %v3918_v61 = vld [vmem:[%s4175_s2] ss:$0 sm:$0xff]  ;;  %v4344_v14 = vld [vmem:[#allocation16_spill] sm:$0xff] }
 0x1f4   : > { %v1426_v11 = vpop.f32.mrf.mxu2 }
 0x1f5   : > { %v3896_v21 = vadd.f32 %v1713_v4, %v1594_v37  ;;  %v1461_v23 = vadd.f32 %v1426_v11, %v1106_v29  ;;  %v4343_v4 = vld [vmem:[#allocation44_spill] sm:$0xff] }
 0x1f7   : > { %2675 = vmatmul.msk.bf16.gmra.mxu3 %vm745_vm4, %v4337_v13 }
 0x1f8   : > { %v1781_v19 = vpop.f32.mrf.mxu1 }
 0x1f9   : > { %v1716_v2 = vpop.f32.mrf.mxu0  ;;  %v1861_v59 = vadd.f32 %v1781_v19, %v4341_v38 }
 0x1fa   : > { %v1560_v58 = vpop.f32.mrf.mxu3 }
 0x1fb   : > { %v1595_v18 = vadd.f32 %v1560_v58, %v1461_v23  ;;  %2642 = vmatmul.msk.bf16.gmra.mxu1 %vm745_vm4, %v4338_v45  ;;  %v4345_v58 = vld [vmem:[#allocation22_spill] sm:$0xff] }
 0x1fc   : > { %2693 = vmatmul.msk.bf16.gmra.mxu0 %vm745_vm4, %v4338_v45  ;;  %v1428_v34 = vpop.f32.mrf.mxu2 }
 0x1fd   : > { %v3905_v28 = vadd.f32 %v1716_v2, %v1595_v18  ;;  %v1462_v10 = vadd.f32 %v1428_v34, %v1108_v27 }
 0x200   : > { %v1783_v52 = vpop.f32.mrf.mxu1 }
 0x201   : > { %v1718_v26 = vpop.f32.mrf.mxu0  ;;  %2659 = vmatmul.msk.bf16.gmra.mxu2 %vm745_vm4, %v4340_v12  ;;  %v1862_v37 = vadd.f32 %v1783_v52, %v4344_v14 }
 0x202   : > { %v1562_v56 = vpop.f32.mrf.mxu3 }
 0x203   : > { %v1596_v8 = vadd.f32 %v1562_v56, %v1462_v10 }
 0x204   : > { %v1915_v50 = vpop.f32.mrf.mxu2 }
 0x205   : > { %v3910_v55 = vadd.f32 %v1718_v26, %v1596_v8  ;;  %v1995_v40 = vadd.f32 %v1915_v50, %v1861_v59  ;;  %v4347_v26 = vld [vmem:[#allocation29_spill] sm:$0xff] }
 0x206   : > { %v4348_v50 = vld [vmem:[#allocation45_spill] sm:$0xff] }
 0x207   : > { %2676 = vmatmul.msk.bf16.gmra.mxu3 %vm745_vm4, %v4342_v15 }
 0x208   : > { %v1786_v35 = vpop.f32.mrf.mxu1 }
 0x209   : > { %v2211_v5 = vpop.f32.mrf.mxu0  ;;  %v1863_v27 = vadd.f32 %v1786_v35, %v4346_v32 }
 0x20a   : > { %v2071_v36 = vpop.f32.mrf.mxu3 }
 0x20b   : > { %v2151_v20 = vadd.f32 %v2071_v36, %v1995_v40  ;;  %2643 = vmatmul.msk.bf16.gmra.mxu1 %vm745_vm4, %v4343_v4  ;;  %v4349_v40 = vld [vmem:[#allocation23_spill] sm:$0xff] }
 0x20c   : > { %2694 = vmatmul.msk.bf16.gmra.mxu0 %vm745_vm4, %v4343_v4  ;;  %v1917_v25 = vpop.f32.mrf.mxu2 }
 0x20d   : > { %v2291_v43 = vadd.f32 %v2211_v5, %v2151_v20  ;;  %v1996_v11 = vadd.f32 %v1917_v25, %v1862_v37  ;;  %v4350_v25 = vld [vmem:[#allocation5_spill] sm:$0xff] }
 0x20f   : > { %v2327_v29 = vadd.f32 %v3918_v61, %v2291_v43 }
 0x210   : > { %v1788_v2 = vpop.f32.mrf.mxu1 }
 0x211   : > { %v2359_v23 = vmax.f32 %v2327_v29, 0.0  ;;  %v2213_v13 = vpop.f32.mrf.mxu0  ;;  %2660 = vmatmul.msk.bf16.gmra.mxu2 %vm745_vm4, %v4345_v58  ;;  %v1864_v5 = vadd.f32 %v1788_v2, %v4349_v40  ;;  %v4352_v58 = vld [vmem:[#allocation9_spill] sm:$0xff] }
 0x212   : > { %v2073_v19 = vpop.f32.mrf.mxu3 }
 0x213   : > { %2392 = vst.msk [vmem:[%s3930_s9] sm:$0xff] %vm2391_vm9, %v2359_v23  ;;  %v2152_v18 = vadd.f32 %v2073_v19, %v1996_v11  ;;  %v4351_v23 = vld [vmem:[#allocation24_spill] sm:$0xff] }
 0x214   : > { %v1920_v34 = vpop.f32.mrf.mxu2 }
 0x215   : > { %v2292_v45 = vadd.f32 %v2213_v13, %v2152_v18  ;;  %v1997_v52 = vadd.f32 %v1920_v34, %v1863_v27 }
 0x217   : > { %v2328_v10 = vadd.f32 %v3918_v61, %v2292_v45  ;;  %2677 = vmatmul.msk.bf16.gmra.mxu3 %vm745_vm4, %v4347_v26  ;;  %v4353_v26 = vld [vmem:[#allocation46_spill] sm:$0xff] }
 0x218   : > { %v1791_v8 = vpop.f32.mrf.mxu1 }
 0x219   : > { %v2360_v56 = vmax.f32 %v2328_v10, 0.0  ;;  %v2216_v12 = vpop.f32.mrf.mxu0  ;;  %v1865_v13 = vadd.f32 %v1791_v8, %v4351_v23 }
 0x21a   : > { %v2076_v38 = vpop.f32.mrf.mxu3 }
 0x21b   : > { %2393 = vst.msk [vmem:[%s3930_s9 + $0x8] sm:$0xff] %vm2391_vm9, %v2360_v56  ;;  %v2153_v59 = vadd.f32 %v2076_v38, %v1997_v52  ;;  %2644 = vmatmul.msk.bf16.gmra.mxu1 %vm745_vm4, %v4348_v50  ;;  %v4354_v56 = vld [vmem:[#allocation6_spill] sm:$0xff] }
 0x21c   : > { %2695 = vmatmul.msk.bf16.gmra.mxu0 %vm745_vm4, %v4348_v50  ;;  %v1922_v35 = vpop.f32.mrf.mxu2 }
 0x21d   : > { %v2293_v15 = vadd.f32 %v2216_v12, %v2153_v59  ;;  %v1998_v20 = vadd.f32 %v1922_v35, %v1864_v5  ;;  %v4355_v35 = vld [vmem:[#allocation10_spill] sm:$0xff] }
 0x21f   : > { %v2329_v36 = vadd.f32 %v3918_v61, %v2293_v15 }
 0x220   : > { %v1793_v14 = vpop.f32.mrf.mxu1 }
 0x221   : > { %v2361_v4 = vmax.f32 %v2329_v36, 0.0  ;;  %v2218_v43 = vpop.f32.mrf.mxu0  ;;  %2661 = vmatmul.msk.bf16.gmra.mxu2 %vm745_vm4, %v4350_v25  ;;  %v1866_v12 = vadd.f32 %v1793_v14, %v4354_v56  ;;  %v4357_v25 = vld [vmem:[#allocation14_spill] sm:$0xff] }
 0x222   : > { %v2078_v37 = vpop.f32.mrf.mxu3 }
 0x223   : > { %2394 = vst.msk [vmem:[%s3930_s9 + $0x10] sm:$0xff] %vm2391_vm9, %v2361_v4  ;;  %v2154_v29 = vadd.f32 %v2078_v37, %v1998_v20  ;;  %v4356_v4 = vld [vmem:[#allocation7_spill] sm:$0xff] }
 0x224   : > { %v1925_v19 = vpop.f32.mrf.mxu2 }
 0x225   : > { %v2294_v11 = vadd.f32 %v2218_v43, %v2154_v29  ;;  %v1999_v18 = vadd.f32 %v1925_v19, %v1865_v13 }
 0x227   : > { %v2330_v2 = vadd.f32 %v3918_v61, %v2294_v11  ;;  %2678 = vmatmul.msk.bf16.gmra.mxu3 %vm745_vm4, %v4352_v58  ;;  %v4358_v58 = vld [vmem:[#allocation47_spill] sm:$0xff] }
 0x228   : > { %v1796_v27 = vpop.f32.mrf.mxu1 }
 0x229   : > { %v2362_v45 = vmax.f32 %v2330_v2, 0.0  ;;  %v2221_v32 = vpop.f32.mrf.mxu0  ;;  %v1867_v43 = vadd.f32 %v1796_v27, %v4356_v4 }
 0x22a   : > { %v2081_v34 = vpop.f32.mrf.mxu3 }
 0x22b   : > { %2395 = vst.msk [vmem:[%s3930_s9 + $0x18] sm:$0xff] %vm2391_vm9, %v2362_v45  ;;  %v2155_v10 = vadd.f32 %v2081_v34, %v1999_v18  ;;  %2645 = vmatmul.msk.bf16.gmra.mxu1 %vm745_vm4, %v4353_v26  ;;  %v4359_v45 = vld [vmem:[#allocation11_spill] sm:$0xff] }
 0x22c   : > { %2696 = vmatmul.msk.bf16.gmra.mxu0 %vm745_vm4, %v4353_v26  ;;  %v1927_v8 = vpop.f32.mrf.mxu2 }
 0x22d   : > { %v2295_v52 = vadd.f32 %v2221_v32, %v2155_v10  ;;  %v2000_v59 = vadd.f32 %v1927_v8, %v1866_v12  ;;  %v4360_v8 = vld [vmem:[#allocation17_spill] sm:$0xff] }
 0x22f   : > { %v2331_v38 = vadd.f32 %v3918_v61, %v2295_v52 }
 0x230   : > { %v1798_v40 = vpop.f32.mrf.mxu1 }
 0x231   : > { %v2363_v50 = vmax.f32 %v2331_v38, 0.0  ;;  %v2223_v15 = vpop.f32.mrf.mxu0  ;;  %2662 = vmatmul.msk.bf16.gmra.mxu2 %vm745_vm4, %v4355_v35  ;;  %v1868_v32 = vadd.f32 %v1798_v40, %v4359_v45  ;;  %v4362_v35 = vld [vmem:[#allocation21_spill] sm:$0xff] }
 0x232   : > { %v2083_v5 = vpop.f32.mrf.mxu3 }
 0x233   : > { %2396 = vst.msk [vmem:[%s3930_s9 + $0x20] sm:$0xff] %vm2391_vm9, %v2363_v50  ;;  %v2156_v36 = vadd.f32 %v2083_v5, %v2000_v59  ;;  %v4361_v50 = vld [vmem:[#allocation12_spill] sm:$0xff] }
 0x234   : > { %v1930_v37 = vpop.f32.mrf.mxu2 }
 0x235   : > { %v2296_v20 = vadd.f32 %v2223_v15, %v2156_v36  ;;  %v2001_v29 = vadd.f32 %v1930_v37, %v1867_v43 }
 0x237   : > { %v2332_v14 = vadd.f32 %v3918_v61, %v2296_v20  ;;  %2679 = vmatmul.msk.bf16.gmra.mxu3 %vm745_vm4, %v4357_v25  ;;  %v4363_v25 = vld [vmem:[#allocation48_spill] sm:$0xff] }
 0x238   : > { %v1801_v13 = vpop.f32.mrf.mxu1 }
 0x239   : > { %v2364_v11 = vmax.f32 %v2332_v14, 0.0  ;;  %v2226_v23 = vpop.f32.mrf.mxu0  ;;  %v1869_v15 = vadd.f32 %v1801_v13, %v4361_v50 }
 0x23a   : > { %v2086_v19 = vpop.f32.mrf.mxu3 }
 0x23b   : > { %2397 = vst.msk [vmem:[%s3930_s9 + $0x28] sm:$0xff] %vm2391_vm9, %v2364_v11  ;;  %v2157_v2 = vadd.f32 %v2086_v19, %v2001_v29  ;;  %2646 = vmatmul.msk.bf16.gmra.mxu1 %vm745_vm4, %v4358_v58  ;;  %v4364_v11 = vld [vmem:[#allocation18_spill] sm:$0xff] }
 0x23c   : > { %2697 = vmatmul.msk.bf16.gmra.mxu0 %vm745_vm4, %v4358_v58  ;;  %v1932_v27 = vpop.f32.mrf.mxu2 }
 0x23d   : > { %v2297_v18 = vadd.f32 %v2226_v23, %v2157_v2  ;;  %v2002_v10 = vadd.f32 %v1932_v27, %v1868_v32 }
 0x23f   : > { %v2333_v34 = vadd.f32 %v3918_v61, %v2297_v18 }
 0x240   : > { %v1803_v56 = vpop.f32.mrf.mxu1 }
 0x241   : > { %v2365_v26 = vmax.f32 %v2333_v34, 0.0  ;;  %v2228_v52 = vpop.f32.mrf.mxu0  ;;  %2663 = vmatmul.msk.bf16.gmra.mxu2 %vm745_vm4, %v4360_v8  ;;  %v1870_v23 = vadd.f32 %v1803_v56, %v4364_v11  ;;  %v250_v56 = vld [vmem:[%s2953_s19 + $0x198] sm:$0xff]  ;;  %v1759_v11 = vrot.slane %v3751_v6, 5 }
 0x242   : > { %v2088_v12 = vpop.f32.mrf.mxu3 }
 0x243   : > { %2398 = vst.msk [vmem:[%s3930_s9 + $0x30] sm:$0xff] %vm2391_vm9, %v2365_v26  ;;  %v2158_v38 = vadd.f32 %v2088_v12, %v2002_v10  ;;  %v4365_v10 = vld [vmem:[#allocation19_spill] sm:$0xff]  ;;  %v251_v12 = vld [vmem:[%s2953_s19 + $0x1a0] sm:$0xff] }
 0x244   : > { %v1935_v5 = vpop.f32.mrf.mxu2 }
 0x245   : > { %v2298_v59 = vadd.f32 %v2228_v52, %v2158_v38  ;;  %v2003_v36 = vadd.f32 %v1935_v5, %v1869_v15 }
 0x247   : > { %v2334_v40 = vadd.f32 %v3918_v61, %v2298_v59  ;;  %2680 = vmatmul.msk.bf16.gmra.mxu3 %vm745_vm4, %v4362_v35  ;;  %v4004_v59 = vpack.c.bf16 %v250_v56, %v250_v56 }
 0x248   : > { %v1806_v43 = vpop.f32.mrf.mxu1 }
 0x249   : > { %v2366_v20 = vmax.f32 %v2334_v40, 0.0  ;;  %v2231_v4 = vpop.f32.mrf.mxu0  ;;  %v1871_v26 = vadd.f32 %v1806_v43, %v4365_v10  ;;  %v1756_v40 = vrot.slane %v3730_v60, 5  ;;  %v2031_v43 = vshll.u32 %v4004_v59, 16 }
 0x24a   : > { %v2091_v37 = vpop.f32.mrf.mxu3 }
 0x24b   : > { %2399 = vst.msk [vmem:[%s3930_s9 + $0x38] sm:$0xff] %vm2391_vm9, %v2366_v20  ;;  %v2159_v14 = vadd.f32 %v2091_v37, %v2003_v36  ;;  %2647 = vmatmul.msk.bf16.gmra.mxu1 %vm745_vm4, %v4363_v25  ;;  %v2632_v20 = vrot.slane %v3728_v62, 9  ;;  %v1758_v62 = vrot.slane %v1756_v40, 4 }
 0x24c   : > { %2698 = vmatmul.msk.bf16.gmra.mxu0 %vm745_vm4, %v4363_v25  ;;  %v1937_v13 = vpop.f32.mrf.mxu2 }
 0x24d   : > { %v2299_v29 = vadd.f32 %v2231_v4, %v2159_v14  ;;  %v2004_v2 = vadd.f32 %v1937_v13, %v1870_v23  ;;  %v2028_v4 = vshrl.u32 %v4004_v59, 16  ;;  %v1757_v13 = vsel %vm3307_vm8, %v2632_v20, %v1756_v40 }
 0x24f   : > { %v2335_v19 = vadd.f32 %v3918_v61, %v2299_v29 }
 0x250   : > { %v1808_v45 = vpop.f32.mrf.mxu1 }
 0x251   : > { %v2367_v58 = vmax.f32 %v2335_v19, 0.0  ;;  %v2233_v18 = vpop.f32.mrf.mxu0  ;;  %2664 = vmatmul.msk.bf16.gmra.mxu2 %vm745_vm4, %v3746_v3  ;;  %v4006_v3 = vpack.c.bf16 %v251_v12, %v251_v12  ;;  %v1872_v25 = vadd.f32 %v1808_v45, %v3753_v49  ;;  %v1760_v49 = vsel %vm3307_vm8, %v1758_v62, %v1759_v11 }
 0x252   : > { %v2093_v32 = vpop.f32.mrf.mxu3  ;;  %v2684_v62 = vrot.slane %v4004_v59, 9 }
 0x253   : > { %2400 = vst.msk [vmem:[%s3930_s9 + $0x40] sm:$0xff] %vm2391_vm9, %v2367_v58  ;;  %v2160_v27 = vadd.f32 %v2093_v32, %v2004_v2  ;;  %v2037_v37 = vshll.u32 %v4006_v3, 16  ;;  %v2041_v60 = vshrl.u32 %v4006_v3, 16  ;;  %v2030_v2 = vrot.slane %v2028_v4, 4 }
 0x254   : > { %v1940_v52 = vpop.f32.mrf.mxu2  ;;  %v2033_v58 = vrot.slane %v2031_v43, 5 }
 0x255   : > { %v2300_v34 = vadd.f32 %v2233_v18, %v2160_v27  ;;  %v2005_v38 = vadd.f32 %v1940_v52, %v1871_v26  ;;  %v2039_v18 = vrot.slane %v2037_v37, 5  ;;  %v2043_v32 = vrot.slane %v2041_v60, 4 }
 0x256   : > { %v1763_v26 = vunpack.c.l.b16 %v1757_v13  ;;  %v1764_v52 = vunpack.c.l.b16 %v1760_v49  ;;  %v2034_v56 = vor.u32 %v2033_v58, %v2030_v2  ;;  %v2186_v60 = vrot.slane %v4006_v3, 5 }
 0x257   : > { %v2336_v8 = vadd.f32 %v3918_v61, %v2300_v34  ;;  %2681 = vmatmul.msk.bf16.gmra.mxu3 %vm745_vm4, %v3305_v53  ;;  %v252_v53 = vld [vmem:[%s2953_s19 + $0x1a8] sm:$0x3]  ;;  %v2044_v12 = vor.u32 %v2043_v32, %v2039_v18  ;;  %s2439_s19 = scalar_lea.hbm %s4176_s3, %s2707_s10 }
 0x258   : > { %v1811_v5 = vpop.f32.mrf.mxu1  ;;  %v306_v19 = vpack.c.bf16 %v252_v53, %v252_v53  ;;  %v2187_v48 = vsel %vm3307_vm8, %v2684_v62, %v2186_v60  ;;  %s2442_s23 = sshll.u32 %s2439_s19, 4  ;;  %s2443_s23 = int_to_ptr.hbm [resolvable:$true] %s2442_s23 }
 0x259   : > { %v2368_v50 = vmax.f32 %v2336_v8, 0.0  ;;  %v2236_v15 = vpop.f32.mrf.mxu0  ;;  %v2045_v20 = vrot.slane %v2044_v12, 4  ;;  %s2785_s26 = sshra.s32 %s2443_s23, 4  ;;  %s2786_s26 = int_to_ptr.hbm [resolvable:$true] %s2785_s26 }
 0x25a   : > { %v2096_v35 = vpop.f32.mrf.mxu3  ;;  %v2047_v8 = vshll.u32 %v306_v19, 16  ;;  %v2189_v13 = vrot.slane %v306_v19, 5  ;;  %s2787_s27 = scalar_lea.hbm %s2786_s26, 256  ;;  %p2792_p1 = scmp.lt.s32.totalorder %s2786_s26, %s4176_s3 }
 0x25b   : > { %2401 = vst.msk [vmem:[%s3930_s9 + $0x48] sm:$0xff] %vm2391_vm9, %v2368_v50  ;;  %v2161_v36 = vadd.f32 %v2096_v35, %v2005_v38  ;;  %2648 = vmatmul.msk.bf16.gmra.mxu1 %vm745_vm4, %v3769_v24  ;;  %v1873_v50 = vadd.f32 %v1811_v5, %v3767_v22  ;;  %v1897_v22 = vunpack.c.l.b16 %v4004_v59  ;;  %v1898_v5 = vunpack.c.l.b16 %v4006_v3  ;;  %p2788_p12 = scmp.ne.s32.totalorder %s2786_s26, %s2787_s27  ;;  %p2793_p2 = scmp.lt.s32.totalorder %s2791_s30, %s2787_s27 }
 0x25c   : > { %2699 = vmatmul.msk.bf16.gmra.mxu0 %vm745_vm4, %v3769_v24  ;;  %v1942_v29 = vpop.f32.mrf.mxu2  ;;  %v2049_v53 = vrot.slane %v2047_v8, 5 }
 0x25d   : > { %v2301_v14 = vadd.f32 %v2236_v15, %v2161_v36  ;;  %v2006_v24 = vadd.f32 %v1942_v29, %v1872_v25  ;;  %v2035_v36 = vrot.slane %v2034_v56, 4  ;;  %v1899_v2 = vpack.c.b16 %v1898_v5, %v1897_v22  ;;  %p2789_p13 = pnand %p2788_p12, %p2914_p4  ;;  %p2794_p3 = por %p2793_p2, %p2792_p1 }
 0x25e   : > { %v2050_v29 = vsel %vm2991_vm5, %v2045_v20, %v2049_v53 }
 0x25f   : > { %v2337_v23 = vadd.f32 %v3918_v61, %v2301_v14  ;;  %p2790_p0 = pneg %p2789_p13 }
 0x260   : > { %v1813_v45 = vpop.f32.mrf.mxu1 }
 0x261   : > { %v2369_v27 = vmax.f32 %v2337_v23, 0.0  ;;  %v2238_v34 = vpop.f32.mrf.mxu0  ;;  %2665 = vmatmul.msk.bf16.gmra.mxu2 %vm745_vm4, %v3779_v1  ;;  %v1765_v1 = vpack.c.b16 %v1764_v52, %v1763_v26  ;;  %v1874_v23 = vadd.f32 %v1813_v45, %v3782_v17  ;;  %p2795_p5 = pnand %p2794_p3, %p2790_p0 }
 0x262   : > { %v2098_v10 = vpop.f32.mrf.mxu3 }
 0x263   : > { %2402 = vst.msk [vmem:[%s3930_s9 + $0x50] sm:$0xff] %vm2391_vm9, %v2369_v27  ;;  %v2162_v6 = vadd.f32 %v2098_v10, %v2006_v24  ;;  %v2188_v24 = vrot.slane %v2186_v60, 4 }
 0x264   : > { %v1945_v15 = vpop.f32.mrf.mxu2 }
 0x265   : > { %v2302_v38 = vadd.f32 %v2238_v34, %v2162_v6  ;;  %v2007_v35 = vadd.f32 %v1945_v15, %v1873_v50  ;;  %v2054_v34 = vunpack.c.l.b16 %v2050_v29  ;;  %v2190_v59 = vsel %vm3307_vm8, %v2188_v24, %v2189_v13 }
 0x266   : > { %v2193_v6 = vunpack.c.l.b16 %v2187_v48  ;;  %v2194_v26 = vunpack.c.l.b16 %v2190_v59 }
 0x267   : > { %v2338_v40 = vadd.f32 %v3918_v61, %v2302_v38  ;;  %2682 = vmatmul.msk.bf16.gmra.mxu3 %vm745_vm4, %v3786_v31  ;;  %v2040_v31 = vsel %vm2991_vm5, %v2035_v36, %v2039_v18 }
 0x268   : > { %v1816_v37 = vpop.f32.mrf.mxu1  ;;  %v2053_v27 = vunpack.c.l.b16 %v2040_v31  ;;  %v2195_v38 = vpack.c.b16 %v2194_v26, %v2193_v6 }
 0x269   : > { %v2370_v4 = vmax.f32 %v2338_v40, 0.0  ;;  %v2241_v43 = vpop.f32.mrf.mxu0  ;;  %v1875_v56 = vadd.f32 %v1816_v37, %v3793_v30 }
 0x26a   : > { %v2101_v14 = vpop.f32.mrf.mxu3  ;;  %v2055_v45 = vpack.c.b16 %v2054_v34, %v2053_v27 }
 0x26b   : > { %2403 = vst.msk [vmem:[%s3930_s9 + $0x58] sm:$0xff] %vm2391_vm9, %v2370_v4  ;;  %v2163_v25 = vadd.f32 %v2101_v14, %v2007_v35  ;;  %2649 = vmatmul.msk.bf16.gmra.mxu1 %vm745_vm4, %v1765_v1 }
 0x26c   : > { %2700 = vmatmul.msk.bf16.gmra.mxu0 %vm745_vm4, %v1765_v1  ;;  %v1947_v3 = vpop.f32.mrf.mxu2 }
 0x26d   : > { %v2303_v11 = vadd.f32 %v2241_v43, %v2163_v25  ;;  %v2008_v32 = vadd.f32 %v1947_v3, %v1874_v23 }
 0x26f   : > { %v2339_v58 = vadd.f32 %v3918_v61, %v2303_v11 }
 0x270   : > { %v1818_v10 = vpop.f32.mrf.mxu1 }
 0x271   : > { %v2371_v49 = vmax.f32 %v2339_v58, 0.0  ;;  %v2243_v18 = vpop.f32.mrf.mxu0  ;;  %2666 = vmatmul.msk.bf16.gmra.mxu2 %vm745_vm4, %v1899_v2  ;;  %v1876_v30 = vadd.f32 %v1818_v10, %v3798_v47 }
 0x272   : > { %v2103_v17 = vpop.f32.mrf.mxu3 }
 0x273   : > { %2404 = vst.msk [vmem:[%s3930_s9 + $0x60] sm:$0xff] %vm2391_vm9, %v2371_v49  ;;  %v2164_v19 = vadd.f32 %v2103_v17, %v2008_v32 }
 0x274   : > { %v1950_v12 = vpop.f32.mrf.mxu2 }
 0x275   : > { %v2304_v52 = vadd.f32 %v2243_v18, %v2164_v19  ;;  %v2009_v7 = vadd.f32 %v1950_v12, %v1875_v56 }
 0x277   : > { %v2340_v8 = vadd.f32 %v3918_v61, %v2304_v52  ;;  %2683 = vmatmul.msk.bf16.gmra.mxu3 %vm745_vm4, %v2055_v45 }
 0x278   : > { %v1821_v40 = vpop.f32.mrf.mxu1 }
 0x279   : > { %v2372_v50 = vmax.f32 %v2340_v8, 0.0  ;;  %v2246_v15 = vpop.f32.mrf.mxu0  ;;  %v1877_v25 = vadd.f32 %v1821_v40, %v3807_v44 }
 0x27a   : > { %v2106_v35 = vpop.f32.mrf.mxu3 }
 0x27b   : > { %2405 = vst.msk [vmem:[%s3930_s9 + $0x68] sm:$0xff] %vm2391_vm9, %v2372_v50  ;;  %v2165_v1 = vadd.f32 %v2106_v35, %v2009_v7 }
 0x27c   : > { %2701 = vmatmul.msk.bf16.gmra.mxu0 %vm745_vm4, %v2195_v38  ;;  %v1952_v20 = vpop.f32.mrf.mxu2 }
 0x27d   : > { %v2305_v36 = vadd.f32 %v2246_v15, %v2165_v1  ;;  %v2010_v4 = vadd.f32 %v1952_v20, %v1876_v30 }
 0x27f   : > { %v2341_v53 = vadd.f32 %v3918_v61, %v2305_v36 }
 0x280   : > { %v1823_v60 = vpop.f32.mrf.mxu1 }
 0x281   : > { %v2373_v43 = vmax.f32 %v2341_v53, 0.0  ;;  %v2248_v37 = vpop.f32.mrf.mxu0  ;;  %v1878_v2 = vadd.f32 %v1823_v60, %v3812_v16 }
 0x282   : > { %v2108_v14 = vpop.f32.mrf.mxu3 }
 0x283   : > { %2406 = vst.msk [vmem:[%s3930_s9 + $0x70] sm:$0xff] %vm2391_vm9, %v2373_v43  ;;  %v2166_v22 = vadd.f32 %v2108_v14, %v2010_v4 }
 0x284   : > { %v1955_v31 = vpop.f32.mrf.mxu2 }
 0x285   : > { %v2306_v5 = vadd.f32 %v2248_v37, %v2166_v22  ;;  %v2011_v62 = vadd.f32 %v1955_v31, %v1877_v25 }
 0x287   : > { %v2342_v29 = vadd.f32 %v3918_v61, %v2306_v5 }
 0x288   : > { %v1826_v23 = vpop.f32.mrf.mxu1 }
 0x289   : > { %v2374_v47 = vmax.f32 %v2342_v29, 0.0  ;;  %v2251_v11 = vpop.f32.mrf.mxu0  ;;  %v1879_v10 = vadd.f32 %v1826_v23, %v3821_v54 }
 0x28a   : > { %v2111_v3 = vpop.f32.mrf.mxu3 }
 0x28b   : > { %2407 = vst.msk [vmem:[%s3930_s9 + $0x78] sm:$0xff] %vm2391_vm9, %v2374_v47  ;;  %v2167_v24 = vadd.f32 %v2111_v3, %v2011_v62 }
 0x28c   : > { %v1957_v58 = vpop.f32.mrf.mxu2 }
 0x28d   : > { %v2307_v13 = vadd.f32 %v2251_v11, %v2167_v24  ;;  %v2012_v27 = vadd.f32 %v1957_v58, %v1878_v2 }
 0x28f   : > { %v2343_v32 = vadd.f32 %v3918_v61, %v2307_v13 }
 0x290   : > { %v1828_v49 = vpop.f32.mrf.mxu1 }
 0x291   : > { %v2375_v44 = vmax.f32 %v2343_v32, 0.0  ;;  %v2253_v34 = vpop.f32.mrf.mxu0  ;;  %v1880_v8 = vadd.f32 %v1828_v49, %v3826_v46 }
 0x292   : > { %v2113_v18 = vpop.f32.mrf.mxu3 }
 0x293   : > { %2408 = vst.msk [vmem:[%s3930_s9 + $0x80] sm:$0xff] %vm2391_vm9, %v2375_v44  ;;  %v2168_v48 = vadd.f32 %v2113_v18, %v2012_v27 }
 0x294   : > { %v1960_v17 = vpop.f32.mrf.mxu2 }
 0x295   : > { %v2308_v59 = vadd.f32 %v2253_v34, %v2168_v48  ;;  %v2013_v45 = vadd.f32 %v1960_v17, %v1879_v10 }
 0x297   : > { %v2344_v19 = vadd.f32 %v3918_v61, %v2308_v59 }
 0x298   : > { %v1831_v26 = vpop.f32.mrf.mxu1 }
 0x299   : > { %v2376_v16 = vmax.f32 %v2344_v19, 0.0  ;;  %v2256_v6 = vpop.f32.mrf.mxu0  ;;  %v1881_v30 = vadd.f32 %v1831_v26, %v3835_v33 }
 0x29a   : > { %v2116_v52 = vpop.f32.mrf.mxu3 }
 0x29b   : > { %2409 = vst.msk [vmem:[%s3930_s9 + $0x88] sm:$0xff] %vm2391_vm9, %v2376_v16  ;;  %v2169_v56 = vadd.f32 %v2116_v52, %v2013_v45 }
 0x29c   : > { %v1962_v7 = vpop.f32.mrf.mxu2 }
 0x29d   : > { %v2309_v12 = vadd.f32 %v2256_v6, %v2169_v56  ;;  %v2014_v50 = vadd.f32 %v1962_v7, %v1880_v8 }
 0x29f   : > { %v2345_v38 = vadd.f32 %v3918_v61, %v2309_v12 }
 0x2a0   : > { %v1833_v40 = vpop.f32.mrf.mxu1 }
 0x2a1   : > { %v2377_v54 = vmax.f32 %v2345_v38, 0.0  ;;  %v2258_v15 = vpop.f32.mrf.mxu0  ;;  %v1882_v5 = vadd.f32 %v1833_v40, %v3840_v41 }
 0x2a2   : > { %v2118_v35 = vpop.f32.mrf.mxu3 }
 0x2a3   : > { %2410 = vst.msk [vmem:[%s3930_s9 + $0x90] sm:$0xff] %vm2391_vm9, %v2377_v54  ;;  %v2170_v1 = vadd.f32 %v2118_v35, %v2014_v50 }
 0x2a4   : > { %v1965_v20 = vpop.f32.mrf.mxu2 }
 0x2a5   : > { %v2310_v36 = vadd.f32 %v2258_v15, %v2170_v1  ;;  %v2015_v4 = vadd.f32 %v1965_v20, %v1881_v30 }
 0x2a7   : > { %v2346_v53 = vadd.f32 %v3918_v61, %v2310_v36 }
 0x2a8   : > { %v1836_v37 = vpop.f32.mrf.mxu1 }
 0x2a9   : > { %v2378_v46 = vmax.f32 %v2346_v53, 0.0  ;;  %v2261_v43 = vpop.f32.mrf.mxu0  ;;  %v1883_v24 = vadd.f32 %v1836_v37, %v3849_v42 }
 0x2aa   : > { %v2121_v60 = vpop.f32.mrf.mxu3 }
 0x2ab   : > { %2411 = vst.msk [vmem:[%s3930_s9 + $0x98] sm:$0xff] %vm2391_vm9, %v2378_v46  ;;  %v2171_v14 = vadd.f32 %v2121_v60, %v2015_v4 }
 0x2ac   : > { %v1967_v25 = vpop.f32.mrf.mxu2 }
 0x2ad   : > { %v2311_v22 = vadd.f32 %v2261_v43, %v2171_v14  ;;  %v2016_v29 = vadd.f32 %v1967_v25, %v1882_v5 }
 0x2af   : > { %v2347_v31 = vadd.f32 %v3918_v61, %v2311_v22 }
 0x2b0   : > { %v1838_v47 = vpop.f32.mrf.mxu1 }
 0x2b1   : > { %v2379_v33 = vmax.f32 %v2347_v31, 0.0  ;;  %v2263_v62 = vpop.f32.mrf.mxu0  ;;  %v1884_v18 = vadd.f32 %v1838_v47, %v3854_v9 }
 0x2b2   : > { %v2123_v11 = vpop.f32.mrf.mxu3 }
 0x2b3   : > { %2412 = vst.msk [vmem:[%s3930_s9 + $0xa0] sm:$0xff] %vm2391_vm9, %v2379_v33  ;;  %v2172_v23 = vadd.f32 %v2123_v11, %v2016_v29 }
 0x2b4   : > { %v1970_v13 = vpop.f32.mrf.mxu2 }
 0x2b5   : > { %v2312_v3 = vadd.f32 %v2263_v62, %v2172_v23  ;;  %v2017_v58 = vadd.f32 %v1970_v13, %v1883_v24 }
 0x2b7   : > { %v2348_v2 = vadd.f32 %v3918_v61, %v2312_v3 }
 0x2b8   : > { %v1841_v27 = vpop.f32.mrf.mxu1 }
 0x2b9   : > { %v2380_v41 = vmax.f32 %v2348_v2, 0.0  ;;  %v2266_v32 = vpop.f32.mrf.mxu0  ;;  %v1885_v26 = vadd.f32 %v1841_v27, %v3863_v51 }
 0x2ba   : > { %v2126_v44 = vpop.f32.mrf.mxu3 }
 0x2bb   : > { %2413 = vst.msk [vmem:[%s3930_s9 + $0xa8] sm:$0xff] %vm2391_vm9, %v2380_v41  ;;  %v2173_v34 = vadd.f32 %v2126_v44, %v2017_v58 }
 0x2bc   : > { %v1972_v48 = vpop.f32.mrf.mxu2 }
 0x2bd   : > { %v2313_v49 = vadd.f32 %v2266_v32, %v2173_v34  ;;  %v2018_v10 = vadd.f32 %v1972_v48, %v1884_v18 }
 0x2bf   : > { %v2349_v59 = vadd.f32 %v3918_v61, %v2313_v49 }
 0x2c0   : > { %v1843_v19 = vpop.f32.mrf.mxu1 }
 0x2c1   : > { %v2381_v42 = vmax.f32 %v2349_v59, 0.0  ;;  %v2268_v17 = vpop.f32.mrf.mxu0  ;;  %v1886_v15 = vadd.f32 %v1843_v19, %v3868_v63 }
 0x2c2   : > { %v2128_v45 = vpop.f32.mrf.mxu3 }
 0x2c3   : > { %2414 = vst.msk [vmem:[%s3930_s9 + $0xb0] sm:$0xff] %vm2391_vm9, %v2381_v42  ;;  %v2174_v16 = vadd.f32 %v2128_v45, %v2018_v10 }
 0x2c4   : > { %v1975_v52 = vpop.f32.mrf.mxu2 }
 0x2c5   : > { %v2314_v6 = vadd.f32 %v2268_v17, %v2174_v16  ;;  %v2019_v12 = vadd.f32 %v1975_v52, %v1885_v26 }
 0x2c7   : > { %v2350_v56 = vadd.f32 %v3918_v61, %v2314_v6 }
 0x2c8   : > { %v1846_v7 = vpop.f32.mrf.mxu1 }
 0x2c9   : > { %v2382_v9 = vmax.f32 %v2350_v56, 0.0  ;;  %v2271_v8 = vpop.f32.mrf.mxu0  ;;  %v1887_v46 = vadd.f32 %v1846_v7, %v3877_v39 }
 0x2ca   : > { %v2131_v38 = vpop.f32.mrf.mxu3 }
 0x2cb   : > { %2415 = vst.msk [vmem:[%s3930_s9 + $0xb8] sm:$0xff] %vm2391_vm9, %v2382_v9  ;;  %v2175_v50 = vadd.f32 %v2131_v38, %v2019_v12 }
 0x2cc   : > { %v1977_v40 = vpop.f32.mrf.mxu2 }
 0x2cd   : > { %v2315_v54 = vadd.f32 %v2271_v8, %v2175_v50  ;;  %v2020_v51 = vadd.f32 %v1977_v40, %v1886_v15 }
 0x2cf   : > { %v2351_v35 = vadd.f32 %v3918_v61, %v2315_v54 }
 0x2d0   : > { %v1848_v30 = vpop.f32.mrf.mxu1 }
 0x2d1   : > { %v2383_v1 = vmax.f32 %v2351_v35, 0.0  ;;  %v2273_v36 = vpop.f32.mrf.mxu0  ;;  %v1888_v29 = vadd.f32 %v1848_v30, %v3882_v57 }
 0x2d2   : > { %v2133_v20 = vpop.f32.mrf.mxu3 }
 0x2d3   : > { %2416 = vst.msk [vmem:[%s3930_s9 + $0xc0] sm:$0xff] %vm2391_vm9, %v2383_v1  ;;  %v2176_v53 = vadd.f32 %v2133_v20, %v2020_v51 }
 0x2d4   : > { %v1980_v43 = vpop.f32.mrf.mxu2 }
 0x2d5   : > { %v2316_v4 = vadd.f32 %v2273_v36, %v2176_v53  ;;  %v2021_v63 = vadd.f32 %v1980_v43, %v1887_v46 }
 0x2d7   : > { %v2352_v37 = vadd.f32 %v3918_v61, %v2316_v4 }
 0x2d8   : > { %v1851_v25 = vpop.f32.mrf.mxu1 }
 0x2d9   : > { %v2384_v60 = vmax.f32 %v2352_v37, 0.0  ;;  %v2276_v14 = vpop.f32.mrf.mxu0  ;;  %v1889_v13 = vadd.f32 %v1851_v25, %v3891_v0 }
 0x2da   : > { %v2136_v22 = vpop.f32.mrf.mxu3 }
 0x2db   : > { %2417 = vst.msk [vmem:[%s3930_s9 + $0xc8] sm:$0xff] %vm2391_vm9, %v2384_v60  ;;  %v2177_v5 = vadd.f32 %v2136_v22, %v2021_v63 }
 0x2dc   : > { %v1982_v33 = vpop.f32.mrf.mxu2 }
 0x2dd   : > { %v2317_v31 = vadd.f32 %v2276_v14, %v2177_v5  ;;  %v2022_v39 = vadd.f32 %v1982_v33, %v1888_v29 }
 0x2df   : > { %v2353_v62 = vadd.f32 %v3918_v61, %v2317_v31 }
 0x2e0   : > { %v1853_v58 = vpop.f32.mrf.mxu1 }
 0x2e1   : > { %v2385_v47 = vmax.f32 %v2353_v62, 0.0  ;;  %v2278_v11 = vpop.f32.mrf.mxu0  ;;  %v1890_v18 = vadd.f32 %v1853_v58, %v3896_v21 }
 0x2e2   : > { %v2138_v23 = vpop.f32.mrf.mxu3 }
 0x2e3   : > { %2418 = vst.msk [vmem:[%s3930_s9 + $0xd0] sm:$0xff] %vm2391_vm9, %v2385_v47  ;;  %v2178_v3 = vadd.f32 %v2138_v23, %v2022_v39 }
 0x2e4   : > { %v1985_v2 = vpop.f32.mrf.mxu2 }
 0x2e5   : > { %v2318_v24 = vadd.f32 %v2278_v11, %v2178_v3  ;;  %v2023_v57 = vadd.f32 %v1985_v2, %v1889_v13 }
 0x2e7   : > { %v2354_v41 = vadd.f32 %v3918_v61, %v2318_v24 }
 0x2e8   : > { %v1856_v0 = vpop.f32.mrf.mxu1 }
 0x2e9   : > { %v2386_v32 = vmax.f32 %v2354_v41, 0.0  ;;  %v2281_v27 = vpop.f32.mrf.mxu0  ;;  %v1891_v6 = vadd.f32 %v1856_v0, %v3905_v28 }
 0x2ea   : > { %v2141_v44 = vpop.f32.mrf.mxu3 }
 0x2eb   : > { %2419 = vst.msk [vmem:[%s3930_s9 + $0xd8] sm:$0xff] %vm2391_vm9, %v2386_v32  ;;  %v2179_v34 = vadd.f32 %v2141_v44, %v2023_v57 }
 0x2ec   : > { %v1987_v48 = vpop.f32.mrf.mxu2 }
 0x2ed   : > { %v2319_v49 = vadd.f32 %v2281_v27, %v2179_v34  ;;  %v2024_v10 = vadd.f32 %v1987_v48, %v1890_v18 }
 0x2ef   : > { %v2355_v59 = vadd.f32 %v3918_v61, %v2319_v49 }
 0x2f0   : > { %v1858_v12 = vpop.f32.mrf.mxu1 }
 0x2f1   : > { %v2387_v42 = vmax.f32 %v2355_v59, 0.0  ;;  %v2283_v17 = vpop.f32.mrf.mxu0  ;;  %v1892_v50 = vadd.f32 %v1858_v12, %v3910_v55 }
 0x2f2   : > { %v2143_v19 = vpop.f32.mrf.mxu3 }
 0x2f3   : > { %2420 = vst.msk [vmem:[%s3930_s9 + $0xe0] sm:$0xff] %vm2391_vm9, %v2387_v42  ;;  %v2180_v45 = vadd.f32 %v2143_v19, %v2024_v10 }
 0x2f4   : > { %v1990_v26 = vpop.f32.mrf.mxu2 }
 0x2f5   : > { %v2320_v16 = vadd.f32 %v2283_v17, %v2180_v45  ;;  %v2025_v21 = vadd.f32 %v1990_v26, %v1891_v6 }
 0x2f7   : > { %v2356_v52 = vadd.f32 %v3918_v61, %v2320_v16 }
 0x2f9   : > { %v2388_v56 = vmax.f32 %v2356_v52, 0.0  ;;  %v2286_v9 = vpop.f32.mrf.mxu0 }
 0x2fa   : > { %v2146_v8 = vpop.f32.mrf.mxu3 }
 0x2fb   : > { %2421 = vst.msk [vmem:[%s3930_s9 + $0xe8] sm:$0xff] %vm2391_vm9, %v2388_v56  ;;  %v2181_v7 = vadd.f32 %v2146_v8, %v2025_v21 }
 0x2fc   : > { %v1992_v54 = vpop.f32.mrf.mxu2 }
 0x2fd   : > { %v2321_v38 = vadd.f32 %v2286_v9, %v2181_v7  ;;  %v2026_v28 = vadd.f32 %v1992_v54, %v1892_v50 }
 0x2ff   : > { %v2357_v15 = vadd.f32 %v3918_v61, %v2321_v38 }
 0x301   : > { %v2389_v40 = vmax.f32 %v2357_v15, 0.0  ;;  %v2288_v1 = vpop.f32.mrf.mxu0 }
 0x302   : > { %v2148_v35 = vpop.f32.mrf.mxu3 }
 0x303   : > { %2422 = vst.msk [vmem:[%s3930_s9 + $0xf0] sm:$0xff] %vm2391_vm9, %v2389_v40  ;;  %v2182_v51 = vadd.f32 %v2148_v35, %v2026_v28 }
 0x305   : > { %v2322_v36 = vadd.f32 %v2288_v1, %v2182_v51 }
 0x307   : > { %v2358_v55 = vadd.f32 %v3918_v61, %v2322_v36 }
 0x309   : > { %v2390_v30 = vmax.f32 %v2358_v55, 0.0 }
 0x30b   : > { %2423 = vst.msk [vmem:[%s3930_s9 + $0xf8] sm:$0xff] %vm2391_vm9, %v2390_v30 }
 0x30c   : > { %2798 = shalt.err (!%p2795_p5)
}
 0x30d   : > { %s2852_s5 = smov 128   ;;  %s2853_s7 = smov 8  }
 0x30e   : > { %2712 = dma.vmem_to_hbm [thread:$0]  (%p2914_p4), %s2441_s21, 4096, %s2443_s23, %s2425_s15, %s2852_s5, %s2852_s5, %s2853_s7  }
 0x30f PF: > { %p2718_p6 = scmp.ge.s32.totalorder %s2849_s17, 2  ;;  %s2457_s8 = sand.u32 1, %s2829_s12  }
 0x310   : > { %s2458_s9 = scalar_lea.sflag [#allocation3], %s2457_s8 }
 0x311   : > { %p2715_p7 = pnand %p2718_p6, %p2921_p8 }
 0x313   : > { %p2716_p9 = pneg %p2715_p7 }
 0x315   : > { %2824 = dma.done.wait (%p2716_p9), %s2458_s9, 4096  }
 0x316   : > { %2826 = vsyncadd (%p2716_p9), %s2458_s9, 4294963200  ;;  %s16_s17 = sadd.s32 1, %s2849_s17   ;;  %s4366_s12 = smov %s2833_s13 }
 0x317   : > { %p13_p10 = scmp.ge.s32.totalorder %s16_s17, 6   ;;  %s4367_s13 = smov %s2837_s14 }
 0x318   : > { %s4368_s14 = smov %s2927_s25  ;;  %s4369_s15 = smov %s2845_s16 }
 0x319   : > { %s4370_s16 = smov %s4372_s20  ;;  %15 = sbr.rel (!%p13_p10) target bundleno = 4 (0x4), region = 75 }
 0x31e   :  { %2464 = vsyncpa [#allocation3], 1 }
 0x31f   :  { %2466 = vsyncpa [#allocation3 + $0x1], 1 }

</bundles_post_ra>
